<compile_context>
chip_gen: v7x
topology: tpu7x:2x2x1
jax: 0.10.0
libtpu: 0.0.40
codegen_flags: <defaults>
</compile_context>

<pallas_src>
import jax
import jax.numpy as jnp
from jax.experimental import pallas as pl
from jax.experimental.pallas import tpu as pltpu


# ----------------------------------------------------------------------------
# Kernel
# ----------------------------------------------------------------------------
def lstm_model_kernel(x_ref,      # (T*BP, I)   time-major, row = t*BP + b
                      wih_ref,    # (I,  4*HP)  zero-padded per gate
                      whh_ref,    # (HP, 4*HP)  zero-padded per gate
                      b_ref,      # (1,  4*HP)  b_ih + b_hh, zero-padded
                      w1_ref,     # (HP, F1P)   fc1 weight (padded)
                      b1_ref,     # (1,  F1P)
                      w2_ref,     # (F1P, O)    fc2 weight (padded rows)
                      b2_ref,     # (1,  O)
                      out_ref):   # (BP, O)
    BP = out_ref.shape[0]
    T = x_ref.shape[0] // BP
    HP = whh_ref.shape[0]

    # ---- Hoisted input projection: one big MXU pass over all timesteps. ----
    gx = (jnp.dot(x_ref[...], wih_ref[...],
                  preferred_element_type=jnp.float32)
          + b_ref[...])                                   # (T*BP, 4*HP)

    whh = whh_ref[...]                                    # loop-invariant
    h = jnp.zeros((BP, HP), jnp.float32)
    c = jnp.zeros((BP, HP), jnp.float32)

    # ---- Fully unrolled recurrence (T is static and small). ----------------
    # gx slices are static, sublane-aligned, contiguous and independent of the
    # (h, c) carry, so they sit off the serial critical path.
    for t in range(T):
        gates = gx[t * BP:(t + 1) * BP, :] + jnp.dot(
            h, whh, preferred_element_type=jnp.float32)   # (BP, 4*HP)
        i_g = jax.nn.sigmoid(gates[:, 0 * HP:1 * HP])
        f_g = jax.nn.sigmoid(gates[:, 1 * HP:2 * HP])
        g_g = jnp.tanh(gates[:, 2 * HP:3 * HP])
        o_g = jax.nn.sigmoid(gates[:, 3 * HP:4 * HP])
        c = f_g * c + i_g * g_g
        h = o_g * jnp.tanh(c)

    # ---- Head: relu(h_T) -> fc1 -> relu -> fc2 -----------------------------
    h = jnp.maximum(h, 0.0)
    y1 = jnp.dot(h, w1_ref[...], preferred_element_type=jnp.float32) + b1_ref[...]
    y1 = jnp.maximum(y1, 0.0)
    out_ref[...] = (jnp.dot(y1, w2_ref[...], preferred_element_type=jnp.float32)
                    + b2_ref[...]).astype(out_ref.dtype)


# ----------------------------------------------------------------------------
# Wrapper
# ----------------------------------------------------------------------------
def lstm_model_forward(x_btI, kparams):
    """x_btI: (B, T, I) float32, PyTorch batch_first layout."""
    B, T, I = x_btI.shape
    O = kparams["w2"].shape[1]

    BP = -(-B // 8) * 8                       # pad batch to sublane quantum

    # Pad batch + go time-major + flatten leading dims. These fuse into one
    # tiny XLA copy; in exchange every per-step gate fetch inside the kernel
    # is a contiguous (8, 4*HP) tile-aligned slice.
    x_p = jnp.pad(x_btI, ((0, BP - B), (0, 0), (0, 0)))   # (BP, T, I)
    x_tm = jnp.transpose(x_p, (1, 0, 2)).reshape(T * BP, I)

    vmem = pl.BlockSpec(memory_space=pltpu.MemorySpace.VMEM)
    out = pl.pallas_call(
        lstm_model_kernel,
        out_shape=jax.ShapeDtypeStruct((BP, O), jnp.float32),
        in_specs=[vmem] * 8,
        out_specs=vmem,
    )(x_tm,
      kparams["wih"], kparams["whh"], kparams["b"],
      kparams["w1"], kparams["b1"], kparams["w2"], kparams["b2"])
    return out[:B]


# ----------------------------------------------------------------------------
# Parameters
# ----------------------------------------------------------------------------
def init_params(key, input_size, hidden_size, output_size):
    """Deterministic PyTorch-style uniform init; raw PyTorch layouts."""
    ks = jax.random.split(key, 8)
    H = hidden_size

    def u(k, shape, bound):
        return jax.random.uniform(k, shape, jnp.float32, -bound, bound)

    bl = 1.0 / jnp.sqrt(H)
    w_ih = u(ks[0], (4 * H, input_size), bl)       # (4H, I)
    w_hh = u(ks[1], (4 * H, H), bl)                # (4H, H)
    b_ih = u(ks[2], (4 * H,), bl)
    b_hh = u(ks[3], (4 * H,), bl)

    b1_fc = 1.0 / jnp.sqrt(H)
    w1 = u(ks[4], (64, H), b1_fc)                  # (64, H)
    b1 = u(ks[5], (64,), b1_fc)
    b2_fc = 1.0 / jnp.sqrt(64.0)
    w2 = u(ks[6], (output_size, 64), b2_fc)        # (O, 64)
    b2 = u(ks[7], (output_size,), b2_fc)

    return dict(w_ih=w_ih, w_hh=w_hh, b_ih=b_ih, b_hh=b_hh,
                w1=w1, b1=b1, w2=w2, b2=b2)


def _pad_axis(a, axis, new_size):
    pads = [(0, 0)] * a.ndim
    pads[axis] = (0, new_size - a.shape[axis])
    return jnp.pad(a, pads)


def prepare_params(raw, lane=128):
    """Transpose to right-multiply form and zero-pad to lane/sublane quanta.

    Each LSTM gate's hidden width H is padded to HP (multiple of 128) so gate
    slices inside the kernel are whole vreg lane groups; padded positions are
    zero so padded h/c lanes stay exactly zero through the recurrence.
    """
    w_ih, w_hh = raw["w_ih"], raw["w_hh"]
    H = w_hh.shape[1]
    HP = -(-H // lane) * lane
    F1 = raw["w1"].shape[0]
    F1P = -(-F1 // lane) * lane
    O = raw["w2"].shape[0]

    def pad_gate_cols(w_t):                        # (rows, 4H) -> (rows, 4*HP)
        parts = [_pad_axis(w_t[:, k * H:(k + 1) * H], 1, HP) for k in range(4)]
        return jnp.concatenate(parts, axis=1)

    wih = pad_gate_cols(w_ih.T)                                # (I, 4*HP)
    whh = pad_gate_cols(_pad_axis(w_hh.T, 0, HP))              # (HP, 4*HP)
    b = pad_gate_cols((raw["b_ih"] + raw["b_hh"]).reshape(1, 4 * H))  # (1, 4*HP)

    w1 = _pad_axis(_pad_axis(raw["w1"].T, 0, HP), 1, F1P)      # (HP, F1P)
    b1 = _pad_axis(raw["b1"].reshape(1, F1), 1, F1P)           # (1, F1P)
    w2 = _pad_axis(raw["w2"].T, 0, F1P)                        # (F1P, O)
    b2 = raw["b2"].reshape(1, O)                               # (1, O)

    return {"wih": wih, "whh": whh, "b": b,
            "w1": w1, "b1": b1, "w2": w2, "b2": b2}


# ----------------------------------------------------------------------------
# Pure-JAX reference (mirrors the PyTorch forward, unpadded math)
# ----------------------------------------------------------------------------
def reference_forward(x_btI, raw):
    H = raw["w_hh"].shape[1]
    wih_t = raw["w_ih"].T
    whh_t = raw["w_hh"].T
    b = raw["b_ih"] + raw["b_hh"]
    B, T, _ = x_btI.shape
    h = jnp.zeros((B, H), jnp.float32)
    c = jnp.zeros((B, H), jnp.float32)
    for t in range(T):
        gates = x_btI[:, t, :] @ wih_t + h @ whh_t + b
        i = jax.nn.sigmoid(gates[:, 0 * H:1 * H])
        f = jax.nn.sigmoid(gates[:, 1 * H:2 * H])
        g = jnp.tanh(gates[:, 2 * H:3 * H])
        o = jax.nn.sigmoid(gates[:, 3 * H:4 * H])
        c = f * c + i * g
        h = o * jnp.tanh(c)
    out = jnp.maximum(h, 0.0)
    out = jnp.maximum(out @ raw["w1"].T + raw["b1"], 0.0)
    return out @ raw["w2"].T + raw["b2"]


if __name__ == "__main__":
    INPUT_SIZE, HIDDEN_SIZE, OUTPUT_SIZE = 16, 32, 8
    B, T = 2, 8

    key = jax.random.PRNGKey(0)
    kx, kp = jax.random.split(key)
    x = jax.random.normal(kx, (B, T, INPUT_SIZE), jnp.float32)

    raw = init_params(kp, INPUT_SIZE, HIDDEN_SIZE, OUTPUT_SIZE)
    kparams = prepare_params(raw)

    fwd = jax.jit(lstm_model_forward)
    out = jax.block_until_ready(fwd(x, kparams))

    ref = reference_forward(x, raw)
    assert out.shape == (B, OUTPUT_SIZE)
    assert jnp.allclose(out, ref, atol=1e-4, rtol=1e-4), "mismatch vs JAX reference"

    print("KERNEL_OK")
</pallas_src>

<mosaic_0001>
module attributes {stable_mosaic.version = 11 : i64} {
  func.func @lstm_model_kernel(%arg0: memref<64x16xf32, #tpu.memory_space<vmem>>, %arg1: memref<16x512xf32, #tpu.memory_space<vmem>>, %arg2: memref<128x512xf32, #tpu.memory_space<vmem>>, %arg3: memref<1x512xf32, #tpu.memory_space<vmem>>, %arg4: memref<128x128xf32, #tpu.memory_space<vmem>>, %arg5: memref<1x128xf32, #tpu.memory_space<vmem>>, %arg6: memref<128x8xf32, #tpu.memory_space<vmem>>, %arg7: memref<1x8xf32, #tpu.memory_space<vmem>>, %arg8: memref<8x8xf32, #tpu.memory_space<vmem>>) attributes {dimension_semantics = [], scalar_prefetch = 0 : i64, scratch_operands = 0 : i64, tpu.core_type = #tpu.core_type<tc>} {
    %c0 = arith.constant 0 : index
    %c0_0 = arith.constant 0 : index
    %0 = vector.load %arg0[%c0, %c0_0] : memref<64x16xf32, #tpu.memory_space<vmem>>, vector<64x16xf32>
    %c0_1 = arith.constant 0 : index
    %c0_2 = arith.constant 0 : index
    %1 = vector.load %arg1[%c0_1, %c0_2] : memref<16x512xf32, #tpu.memory_space<vmem>>, vector<16x512xf32>
    %cst = arith.constant dense<0.000000e+00> : vector<64x512xf32>
    %2 = tpu.matmul %0, %1, %cst {dimension_numbers = #tpu.dot_dimension_numbers<[1], [0], [0], [1], [0, 0, 1, 1], [], []>} : vector<64x16xf32>, vector<16x512xf32>, vector<64x512xf32> -> vector<64x512xf32>
    %c0_3 = arith.constant 0 : index
    %c0_4 = arith.constant 0 : index
    %3 = vector.load %arg3[%c0_3, %c0_4] : memref<1x512xf32, #tpu.memory_space<vmem>>, vector<1x512xf32>
    %4 = vector.broadcast %3 : vector<1x512xf32> to vector<64x512xf32>
    %5 = arith.addf %2, %4 : vector<64x512xf32>
    %c0_5 = arith.constant 0 : index
    %c0_6 = arith.constant 0 : index
    %6 = vector.load %arg2[%c0_5, %c0_6] : memref<128x512xf32, #tpu.memory_space<vmem>>, vector<128x512xf32>
    %cst_7 = arith.constant 0.000000e+00 : f32
    %7 = vector.broadcast %cst_7 : f32 to vector<8x128xf32>
    %cst_8 = arith.constant 0.000000e+00 : f32
    %8 = vector.broadcast %cst_8 : f32 to vector<8x128xf32>
    %9 = vector.extract_strided_slice %5 {offsets = [0, 0], sizes = [8, 512], strides = [1, 1]} : vector<64x512xf32> to vector<8x512xf32>
    %cst_9 = arith.constant dense<0.000000e+00> : vector<8x512xf32>
    %10 = tpu.matmul %7, %6, %cst_9 {dimension_numbers = #tpu.dot_dimension_numbers<[1], [0], [0], [1], [0, 0, 1, 1], [], []>} : vector<8x128xf32>, vector<128x512xf32>, vector<8x512xf32> -> vector<8x512xf32>
    %11 = arith.addf %9, %10 : vector<8x512xf32>
    %12 = vector.extract_strided_slice %11 {offsets = [0, 0], sizes = [8, 128], strides = [1, 1]} : vector<8x512xf32> to vector<8x128xf32>
    %13 = arith.negf %12 : vector<8x128xf32>
    %14 = math.exp %13 : vector<8x128xf32>
    %cst_10 = arith.constant 1.000000e+00 : f32
    %15 = vector.broadcast %cst_10 : f32 to vector<8x128xf32>
    %16 = arith.addf %15, %14 : vector<8x128xf32>
    %17 = arith.divf %15, %16 : vector<8x128xf32>
    %18 = vector.extract_strided_slice %11 {offsets = [0, 128], sizes = [8, 128], strides = [1, 1]} : vector<8x512xf32> to vector<8x128xf32>
    %19 = arith.negf %18 : vector<8x128xf32>
    %20 = math.exp %19 : vector<8x128xf32>
    %cst_11 = arith.constant 1.000000e+00 : f32
    %21 = vector.broadcast %cst_11 : f32 to vector<8x128xf32>
    %22 = arith.addf %21, %20 : vector<8x128xf32>
    %23 = arith.divf %21, %22 : vector<8x128xf32>
    %24 = vector.extract_strided_slice %11 {offsets = [0, 256], sizes = [8, 128], strides = [1, 1]} : vector<8x512xf32> to vector<8x128xf32>
    %25 = math.tanh %24 : vector<8x128xf32>
    %26 = vector.extract_strided_slice %11 {offsets = [0, 384], sizes = [8, 128], strides = [1, 1]} : vector<8x512xf32> to vector<8x128xf32>
    %27 = arith.negf %26 : vector<8x128xf32>
    %28 = math.exp %27 : vector<8x128xf32>
    %cst_12 = arith.constant 1.000000e+00 : f32
    %29 = vector.broadcast %cst_12 : f32 to vector<8x128xf32>
    %30 = arith.addf %29, %28 : vector<8x128xf32>
    %31 = arith.divf %29, %30 : vector<8x128xf32>
    %32 = arith.mulf %23, %8 : vector<8x128xf32>
    %33 = arith.mulf %17, %25 : vector<8x128xf32>
    %34 = arith.addf %32, %33 : vector<8x128xf32>
    %35 = math.tanh %34 : vector<8x128xf32>
    %36 = arith.mulf %31, %35 : vector<8x128xf32>
    %37 = vector.extract_strided_slice %5 {offsets = [8, 0], sizes = [8, 512], strides = [1, 1]} : vector<64x512xf32> to vector<8x512xf32>
    %cst_13 = arith.constant dense<0.000000e+00> : vector<8x512xf32>
    %38 = tpu.matmul %36, %6, %cst_13 {dimension_numbers = #tpu.dot_dimension_numbers<[1], [0], [0], [1], [0, 0, 1, 1], [], []>} : vector<8x128xf32>, vector<128x512xf32>, vector<8x512xf32> -> vector<8x512xf32>
    %39 = arith.addf %37, %38 : vector<8x512xf32>
    %40 = vector.extract_strided_slice %39 {offsets = [0, 0], sizes = [8, 128], strides = [1, 1]} : vector<8x512xf32> to vector<8x128xf32>
    %41 = arith.negf %40 : vector<8x128xf32>
    %42 = math.exp %41 : vector<8x128xf32>
    %cst_14 = arith.constant 1.000000e+00 : f32
    %43 = vector.broadcast %cst_14 : f32 to vector<8x128xf32>
    %44 = arith.addf %43, %42 : vector<8x128xf32>
    %45 = arith.divf %43, %44 : vector<8x128xf32>
    %46 = vector.extract_strided_slice %39 {offsets = [0, 128], sizes = [8, 128], strides = [1, 1]} : vector<8x512xf32> to vector<8x128xf32>
    %47 = arith.negf %46 : vector<8x128xf32>
    %48 = math.exp %47 : vector<8x128xf32>
    %cst_15 = arith.constant 1.000000e+00 : f32
    %49 = vector.broadcast %cst_15 : f32 to vector<8x128xf32>
    %50 = arith.addf %49, %48 : vector<8x128xf32>
    %51 = arith.divf %49, %50 : vector<8x128xf32>
    %52 = vector.extract_strided_slice %39 {offsets = [0, 256], sizes = [8, 128], strides = [1, 1]} : vector<8x512xf32> to vector<8x128xf32>
    %53 = math.tanh %52 : vector<8x128xf32>
    %54 = vector.extract_strided_slice %39 {offsets = [0, 384], sizes = [8, 128], strides = [1, 1]} : vector<8x512xf32> to vector<8x128xf32>
    %55 = arith.negf %54 : vector<8x128xf32>
    %56 = math.exp %55 : vector<8x128xf32>
    %cst_16 = arith.constant 1.000000e+00 : f32
    %57 = vector.broadcast %cst_16 : f32 to vector<8x128xf32>
    %58 = arith.addf %57, %56 : vector<8x128xf32>
    %59 = arith.divf %57, %58 : vector<8x128xf32>
    %60 = arith.mulf %51, %34 : vector<8x128xf32>
    %61 = arith.mulf %45, %53 : vector<8x128xf32>
    %62 = arith.addf %60, %61 : vector<8x128xf32>
    %63 = math.tanh %62 : vector<8x128xf32>
    %64 = arith.mulf %59, %63 : vector<8x128xf32>
    %65 = vector.extract_strided_slice %5 {offsets = [16, 0], sizes = [8, 512], strides = [1, 1]} : vector<64x512xf32> to vector<8x512xf32>
    %cst_17 = arith.constant dense<0.000000e+00> : vector<8x512xf32>
    %66 = tpu.matmul %64, %6, %cst_17 {dimension_numbers = #tpu.dot_dimension_numbers<[1], [0], [0], [1], [0, 0, 1, 1], [], []>} : vector<8x128xf32>, vector<128x512xf32>, vector<8x512xf32> -> vector<8x512xf32>
    %67 = arith.addf %65, %66 : vector<8x512xf32>
    %68 = vector.extract_strided_slice %67 {offsets = [0, 0], sizes = [8, 128], strides = [1, 1]} : vector<8x512xf32> to vector<8x128xf32>
    %69 = arith.negf %68 : vector<8x128xf32>
    %70 = math.exp %69 : vector<8x128xf32>
    %cst_18 = arith.constant 1.000000e+00 : f32
    %71 = vector.broadcast %cst_18 : f32 to vector<8x128xf32>
    %72 = arith.addf %71, %70 : vector<8x128xf32>
    %73 = arith.divf %71, %72 : vector<8x128xf32>
    %74 = vector.extract_strided_slice %67 {offsets = [0, 128], sizes = [8, 128], strides = [1, 1]} : vector<8x512xf32> to vector<8x128xf32>
    %75 = arith.negf %74 : vector<8x128xf32>
    %76 = math.exp %75 : vector<8x128xf32>
    %cst_19 = arith.constant 1.000000e+00 : f32
    %77 = vector.broadcast %cst_19 : f32 to vector<8x128xf32>
    %78 = arith.addf %77, %76 : vector<8x128xf32>
    %79 = arith.divf %77, %78 : vector<8x128xf32>
    %80 = vector.extract_strided_slice %67 {offsets = [0, 256], sizes = [8, 128], strides = [1, 1]} : vector<8x512xf32> to vector<8x128xf32>
    %81 = math.tanh %80 : vector<8x128xf32>
    %82 = vector.extract_strided_slice %67 {offsets = [0, 384], sizes = [8, 128], strides = [1, 1]} : vector<8x512xf32> to vector<8x128xf32>
    %83 = arith.negf %82 : vector<8x128xf32>
    %84 = math.exp %83 : vector<8x128xf32>
    %cst_20 = arith.constant 1.000000e+00 : f32
    %85 = vector.broadcast %cst_20 : f32 to vector<8x128xf32>
    %86 = arith.addf %85, %84 : vector<8x128xf32>
    %87 = arith.divf %85, %86 : vector<8x128xf32>
    %88 = arith.mulf %79, %62 : vector<8x128xf32>
    %89 = arith.mulf %73, %81 : vector<8x128xf32>
    %90 = arith.addf %88, %89 : vector<8x128xf32>
    %91 = math.tanh %90 : vector<8x128xf32>
    %92 = arith.mulf %87, %91 : vector<8x128xf32>
    %93 = vector.extract_strided_slice %5 {offsets = [24, 0], sizes = [8, 512], strides = [1, 1]} : vector<64x512xf32> to vector<8x512xf32>
    %cst_21 = arith.constant dense<0.000000e+00> : vector<8x512xf32>
    %94 = tpu.matmul %92, %6, %cst_21 {dimension_numbers = #tpu.dot_dimension_numbers<[1], [0], [0], [1], [0, 0, 1, 1], [], []>} : vector<8x128xf32>, vector<128x512xf32>, vector<8x512xf32> -> vector<8x512xf32>
    %95 = arith.addf %93, %94 : vector<8x512xf32>
    %96 = vector.extract_strided_slice %95 {offsets = [0, 0], sizes = [8, 128], strides = [1, 1]} : vector<8x512xf32> to vector<8x128xf32>
    %97 = arith.negf %96 : vector<8x128xf32>
    %98 = math.exp %97 : vector<8x128xf32>
    %cst_22 = arith.constant 1.000000e+00 : f32
    %99 = vector.broadcast %cst_22 : f32 to vector<8x128xf32>
    %100 = arith.addf %99, %98 : vector<8x128xf32>
    %101 = arith.divf %99, %100 : vector<8x128xf32>
    %102 = vector.extract_strided_slice %95 {offsets = [0, 128], sizes = [8, 128], strides = [1, 1]} : vector<8x512xf32> to vector<8x128xf32>
    %103 = arith.negf %102 : vector<8x128xf32>
    %104 = math.exp %103 : vector<8x128xf32>
    %cst_23 = arith.constant 1.000000e+00 : f32
    %105 = vector.broadcast %cst_23 : f32 to vector<8x128xf32>
    %106 = arith.addf %105, %104 : vector<8x128xf32>
    %107 = arith.divf %105, %106 : vector<8x128xf32>
    %108 = vector.extract_strided_slice %95 {offsets = [0, 256], sizes = [8, 128], strides = [1, 1]} : vector<8x512xf32> to vector<8x128xf32>
    %109 = math.tanh %108 : vector<8x128xf32>
    %110 = vector.extract_strided_slice %95 {offsets = [0, 384], sizes = [8, 128], strides = [1, 1]} : vector<8x512xf32> to vector<8x128xf32>
    %111 = arith.negf %110 : vector<8x128xf32>
    %112 = math.exp %111 : vector<8x128xf32>
    %cst_24 = arith.constant 1.000000e+00 : f32
    %113 = vector.broadcast %cst_24 : f32 to vector<8x128xf32>
    %114 = arith.addf %113, %112 : vector<8x128xf32>
    %115 = arith.divf %113, %114 : vector<8x128xf32>
    %116 = arith.mulf %107, %90 : vector<8x128xf32>
    %117 = arith.mulf %101, %109 : vector<8x128xf32>
    %118 = arith.addf %116, %117 : vector<8x128xf32>
    %119 = math.tanh %118 : vector<8x128xf32>
    %120 = arith.mulf %115, %119 : vector<8x128xf32>
    %121 = vector.extract_strided_slice %5 {offsets = [32, 0], sizes = [8, 512], strides = [1, 1]} : vector<64x512xf32> to vector<8x512xf32>
    %cst_25 = arith.constant dense<0.000000e+00> : vector<8x512xf32>
    %122 = tpu.matmul %120, %6, %cst_25 {dimension_numbers = #tpu.dot_dimension_numbers<[1], [0], [0], [1], [0, 0, 1, 1], [], []>} : vector<8x128xf32>, vector<128x512xf32>, vector<8x512xf32> -> vector<8x512xf32>
    %123 = arith.addf %121, %122 : vector<8x512xf32>
    %124 = vector.extract_strided_slice %123 {offsets = [0, 0], sizes = [8, 128], strides = [1, 1]} : vector<8x512xf32> to vector<8x128xf32>
    %125 = arith.negf %124 : vector<8x128xf32>
    %126 = math.exp %125 : vector<8x128xf32>
    %cst_26 = arith.constant 1.000000e+00 : f32
    %127 = vector.broadcast %cst_26 : f32 to vector<8x128xf32>
    %128 = arith.addf %127, %126 : vector<8x128xf32>
    %129 = arith.divf %127, %128 : vector<8x128xf32>
    %130 = vector.extract_strided_slice %123 {offsets = [0, 128], sizes = [8, 128], strides = [1, 1]} : vector<8x512xf32> to vector<8x128xf32>
    %131 = arith.negf %130 : vector<8x128xf32>
    %132 = math.exp %131 : vector<8x128xf32>
    %cst_27 = arith.constant 1.000000e+00 : f32
    %133 = vector.broadcast %cst_27 : f32 to vector<8x128xf32>
    %134 = arith.addf %133, %132 : vector<8x128xf32>
    %135 = arith.divf %133, %134 : vector<8x128xf32>
    %136 = vector.extract_strided_slice %123 {offsets = [0, 256], sizes = [8, 128], strides = [1, 1]} : vector<8x512xf32> to vector<8x128xf32>
    %137 = math.tanh %136 : vector<8x128xf32>
    %138 = vector.extract_strided_slice %123 {offsets = [0, 384], sizes = [8, 128], strides = [1, 1]} : vector<8x512xf32> to vector<8x128xf32>
    %139 = arith.negf %138 : vector<8x128xf32>
    %140 = math.exp %139 : vector<8x128xf32>
    %cst_28 = arith.constant 1.000000e+00 : f32
    %141 = vector.broadcast %cst_28 : f32 to vector<8x128xf32>
    %142 = arith.addf %141, %140 : vector<8x128xf32>
    %143 = arith.divf %141, %142 : vector<8x128xf32>
    %144 = arith.mulf %135, %118 : vector<8x128xf32>
    %145 = arith.mulf %129, %137 : vector<8x128xf32>
    %146 = arith.addf %144, %145 : vector<8x128xf32>
    %147 = math.tanh %146 : vector<8x128xf32>
    %148 = arith.mulf %143, %147 : vector<8x128xf32>
    %149 = vector.extract_strided_slice %5 {offsets = [40, 0], sizes = [8, 512], strides = [1, 1]} : vector<64x512xf32> to vector<8x512xf32>
    %cst_29 = arith.constant dense<0.000000e+00> : vector<8x512xf32>
    %150 = tpu.matmul %148, %6, %cst_29 {dimension_numbers = #tpu.dot_dimension_numbers<[1], [0], [0], [1], [0, 0, 1, 1], [], []>} : vector<8x128xf32>, vector<128x512xf32>, vector<8x512xf32> -> vector<8x512xf32>
    %151 = arith.addf %149, %150 : vector<8x512xf32>
    %152 = vector.extract_strided_slice %151 {offsets = [0, 0], sizes = [8, 128], strides = [1, 1]} : vector<8x512xf32> to vector<8x128xf32>
    %153 = arith.negf %152 : vector<8x128xf32>
    %154 = math.exp %153 : vector<8x128xf32>
    %cst_30 = arith.constant 1.000000e+00 : f32
    %155 = vector.broadcast %cst_30 : f32 to vector<8x128xf32>
    %156 = arith.addf %155, %154 : vector<8x128xf32>
    %157 = arith.divf %155, %156 : vector<8x128xf32>
    %158 = vector.extract_strided_slice %151 {offsets = [0, 128], sizes = [8, 128], strides = [1, 1]} : vector<8x512xf32> to vector<8x128xf32>
    %159 = arith.negf %158 : vector<8x128xf32>
    %160 = math.exp %159 : vector<8x128xf32>
    %cst_31 = arith.constant 1.000000e+00 : f32
    %161 = vector.broadcast %cst_31 : f32 to vector<8x128xf32>
    %162 = arith.addf %161, %160 : vector<8x128xf32>
    %163 = arith.divf %161, %162 : vector<8x128xf32>
    %164 = vector.extract_strided_slice %151 {offsets = [0, 256], sizes = [8, 128], strides = [1, 1]} : vector<8x512xf32> to vector<8x128xf32>
    %165 = math.tanh %164 : vector<8x128xf32>
    %166 = vector.extract_strided_slice %151 {offsets = [0, 384], sizes = [8, 128], strides = [1, 1]} : vector<8x512xf32> to vector<8x128xf32>
    %167 = arith.negf %166 : vector<8x128xf32>
    %168 = math.exp %167 : vector<8x128xf32>
    %cst_32 = arith.constant 1.000000e+00 : f32
    %169 = vector.broadcast %cst_32 : f32 to vector<8x128xf32>
    %170 = arith.addf %169, %168 : vector<8x128xf32>
    %171 = arith.divf %169, %170 : vector<8x128xf32>
    %172 = arith.mulf %163, %146 : vector<8x128xf32>
    %173 = arith.mulf %157, %165 : vector<8x128xf32>
    %174 = arith.addf %172, %173 : vector<8x128xf32>
    %175 = math.tanh %174 : vector<8x128xf32>
    %176 = arith.mulf %171, %175 : vector<8x128xf32>
    %177 = vector.extract_strided_slice %5 {offsets = [48, 0], sizes = [8, 512], strides = [1, 1]} : vector<64x512xf32> to vector<8x512xf32>
    %cst_33 = arith.constant dense<0.000000e+00> : vector<8x512xf32>
    %178 = tpu.matmul %176, %6, %cst_33 {dimension_numbers = #tpu.dot_dimension_numbers<[1], [0], [0], [1], [0, 0, 1, 1], [], []>} : vector<8x128xf32>, vector<128x512xf32>, vector<8x512xf32> -> vector<8x512xf32>
    %179 = arith.addf %177, %178 : vector<8x512xf32>
    %180 = vector.extract_strided_slice %179 {offsets = [0, 0], sizes = [8, 128], strides = [1, 1]} : vector<8x512xf32> to vector<8x128xf32>
    %181 = arith.negf %180 : vector<8x128xf32>
    %182 = math.exp %181 : vector<8x128xf32>
    %cst_34 = arith.constant 1.000000e+00 : f32
    %183 = vector.broadcast %cst_34 : f32 to vector<8x128xf32>
    %184 = arith.addf %183, %182 : vector<8x128xf32>
    %185 = arith.divf %183, %184 : vector<8x128xf32>
    %186 = vector.extract_strided_slice %179 {offsets = [0, 128], sizes = [8, 128], strides = [1, 1]} : vector<8x512xf32> to vector<8x128xf32>
    %187 = arith.negf %186 : vector<8x128xf32>
    %188 = math.exp %187 : vector<8x128xf32>
    %cst_35 = arith.constant 1.000000e+00 : f32
    %189 = vector.broadcast %cst_35 : f32 to vector<8x128xf32>
    %190 = arith.addf %189, %188 : vector<8x128xf32>
    %191 = arith.divf %189, %190 : vector<8x128xf32>
    %192 = vector.extract_strided_slice %179 {offsets = [0, 256], sizes = [8, 128], strides = [1, 1]} : vector<8x512xf32> to vector<8x128xf32>
    %193 = math.tanh %192 : vector<8x128xf32>
    %194 = vector.extract_strided_slice %179 {offsets = [0, 384], sizes = [8, 128], strides = [1, 1]} : vector<8x512xf32> to vector<8x128xf32>
    %195 = arith.negf %194 : vector<8x128xf32>
    %196 = math.exp %195 : vector<8x128xf32>
    %cst_36 = arith.constant 1.000000e+00 : f32
    %197 = vector.broadcast %cst_36 : f32 to vector<8x128xf32>
    %198 = arith.addf %197, %196 : vector<8x128xf32>
    %199 = arith.divf %197, %198 : vector<8x128xf32>
    %200 = arith.mulf %191, %174 : vector<8x128xf32>
    %201 = arith.mulf %185, %193 : vector<8x128xf32>
    %202 = arith.addf %200, %201 : vector<8x128xf32>
    %203 = math.tanh %202 : vector<8x128xf32>
    %204 = arith.mulf %199, %203 : vector<8x128xf32>
    %205 = vector.extract_strided_slice %5 {offsets = [56, 0], sizes = [8, 512], strides = [1, 1]} : vector<64x512xf32> to vector<8x512xf32>
    %cst_37 = arith.constant dense<0.000000e+00> : vector<8x512xf32>
    %206 = tpu.matmul %204, %6, %cst_37 {dimension_numbers = #tpu.dot_dimension_numbers<[1], [0], [0], [1], [0, 0, 1, 1], [], []>} : vector<8x128xf32>, vector<128x512xf32>, vector<8x512xf32> -> vector<8x512xf32>
    %207 = arith.addf %205, %206 : vector<8x512xf32>
    %208 = vector.extract_strided_slice %207 {offsets = [0, 0], sizes = [8, 128], strides = [1, 1]} : vector<8x512xf32> to vector<8x128xf32>
    %209 = arith.negf %208 : vector<8x128xf32>
    %210 = math.exp %209 : vector<8x128xf32>
    %cst_38 = arith.constant 1.000000e+00 : f32
    %211 = vector.broadcast %cst_38 : f32 to vector<8x128xf32>
    %212 = arith.addf %211, %210 : vector<8x128xf32>
    %213 = arith.divf %211, %212 : vector<8x128xf32>
    %214 = vector.extract_strided_slice %207 {offsets = [0, 128], sizes = [8, 128], strides = [1, 1]} : vector<8x512xf32> to vector<8x128xf32>
    %215 = arith.negf %214 : vector<8x128xf32>
    %216 = math.exp %215 : vector<8x128xf32>
    %cst_39 = arith.constant 1.000000e+00 : f32
    %217 = vector.broadcast %cst_39 : f32 to vector<8x128xf32>
    %218 = arith.addf %217, %216 : vector<8x128xf32>
    %219 = arith.divf %217, %218 : vector<8x128xf32>
    %220 = vector.extract_strided_slice %207 {offsets = [0, 256], sizes = [8, 128], strides = [1, 1]} : vector<8x512xf32> to vector<8x128xf32>
    %221 = math.tanh %220 : vector<8x128xf32>
    %222 = vector.extract_strided_slice %207 {offsets = [0, 384], sizes = [8, 128], strides = [1, 1]} : vector<8x512xf32> to vector<8x128xf32>
    %223 = arith.negf %222 : vector<8x128xf32>
    %224 = math.exp %223 : vector<8x128xf32>
    %cst_40 = arith.constant 1.000000e+00 : f32
    %225 = vector.broadcast %cst_40 : f32 to vector<8x128xf32>
    %226 = arith.addf %225, %224 : vector<8x128xf32>
    %227 = arith.divf %225, %226 : vector<8x128xf32>
    %228 = arith.mulf %219, %202 : vector<8x128xf32>
    %229 = arith.mulf %213, %221 : vector<8x128xf32>
    %230 = arith.addf %228, %229 : vector<8x128xf32>
    %231 = math.tanh %230 : vector<8x128xf32>
    %232 = arith.mulf %227, %231 : vector<8x128xf32>
    %cst_41 = arith.constant 0.000000e+00 : f32
    %233 = vector.broadcast %cst_41 : f32 to vector<8x128xf32>
    %234 = arith.maximumf %232, %233 : vector<8x128xf32>
    %c0_42 = arith.constant 0 : index
    %c0_43 = arith.constant 0 : index
    %235 = vector.load %arg4[%c0_42, %c0_43] : memref<128x128xf32, #tpu.memory_space<vmem>>, vector<128x128xf32>
    %cst_44 = arith.constant dense<0.000000e+00> : vector<8x128xf32>
    %236 = tpu.matmul %234, %235, %cst_44 {dimension_numbers = #tpu.dot_dimension_numbers<[1], [0], [0], [1], [0, 0, 1, 1], [], []>} : vector<8x128xf32>, vector<128x128xf32>, vector<8x128xf32> -> vector<8x128xf32>
    %c0_45 = arith.constant 0 : index
    %c0_46 = arith.constant 0 : index
    %237 = vector.load %arg5[%c0_45, %c0_46] : memref<1x128xf32, #tpu.memory_space<vmem>>, vector<1x128xf32>
    %238 = vector.broadcast %237 : vector<1x128xf32> to vector<8x128xf32>
    %239 = arith.addf %236, %238 : vector<8x128xf32>
    %cst_47 = arith.constant 0.000000e+00 : f32
    %240 = vector.broadcast %cst_47 : f32 to vector<8x128xf32>
    %241 = arith.maximumf %239, %240 : vector<8x128xf32>
    %c0_48 = arith.constant 0 : index
    %c0_49 = arith.constant 0 : index
    %242 = vector.load %arg6[%c0_48, %c0_49] : memref<128x8xf32, #tpu.memory_space<vmem>>, vector<128x8xf32>
    %cst_50 = arith.constant dense<0.000000e+00> : vector<8x8xf32>
    %243 = tpu.matmul %241, %242, %cst_50 {dimension_numbers = #tpu.dot_dimension_numbers<[1], [0], [0], [1], [0, 0, 1, 1], [], []>} : vector<8x128xf32>, vector<128x8xf32>, vector<8x8xf32> -> vector<8x8xf32>
    %c0_51 = arith.constant 0 : index
    %c0_52 = arith.constant 0 : index
    %244 = vector.load %arg7[%c0_51, %c0_52] : memref<1x8xf32, #tpu.memory_space<vmem>>, vector<1x8xf32>
    %245 = vector.broadcast %244 : vector<1x8xf32> to vector<8x8xf32>
    %246 = arith.addf %243, %245 : vector<8x8xf32>
    %c0_53 = arith.constant 0 : index
    %c0_54 = arith.constant 0 : index
    %247 = vector.load %arg8[%c0_53, %c0_54] : memref<8x8xf32, #tpu.memory_space<vmem>>, vector<8x8xf32>
    tpu.vector_store %arg8[%c0_53, %c0_54], %246 {strides = array<i32>} : memref<8x8xf32, #tpu.memory_space<vmem>>, vector<8x8xf32>,
    return
  }
}

</mosaic_0001>

<bundles_post_ra>
// kernel: lstm_model_forward.1
= control target key start
LH: loop header
LB: loop body
LE: loop exit
PB: predicated region body
PF: predicated region fallthrough
CT: control target
= control target key end

     0   :  { %13 = vsyncpa [#allocation3], 0  ;;  %s2887_s27 = smov [#allocation2]   ;;  %s3562_s0 = inlined_call_operand.vmem [shape: f32[64,16], index: 0, kind: input, shape index: {}]   ;;  %s3563_s1 = inlined_call_operand.vmem [shape: f32[16,512], index: 1, kind: input, shape index: {}]   ;;  %s3564_s2 = inlined_call_operand.hbm [shape: f32[128,512], index: 2, kind: input, shape index: {}]   ;;  %s3565_s3 = inlined_call_operand.vmem [shape: f32[1,512], index: 3, kind: input, shape index: {}]   ;;  %s3566_s4 = inlined_call_operand.vmem [shape: f32[128,128], index: 4, kind: input, shape index: {}]   ;;  %s3567_s5 = inlined_call_operand.vmem [shape: f32[1,128], index: 5, kind: input, shape index: {}]   ;;  %s3568_s6 = inlined_call_operand.vmem [shape: f32[128,8], index: 6, kind: input, shape index: {}]   ;;  %s3569_s7 = inlined_call_operand.vmem [shape: f32[1,8], index: 7, kind: input, shape index: {}]   ;;  %s3570_s8 = inlined_call_operand.vmem [shape: f32[8,8], index: 8, kind: output, shape index: {}]  }
   0x1   :  { %s23_s28 = sshll.u32 %s2887_s27, 4  ;;  %s2863_s9 = scalar_lea.hbm %s3564_s2, 8192  ;;  %s24_s28 = int_to_ptr.vmem [resolvable:$true] %s23_s28 }
   0x2   :  { %p2864_p0 = scmp.ne.s32.totalorder %s3564_s2, %s2863_s9  ;;  %p2867_p1 = scmp.lt.u32.totalorder %s2863_s9, %s3564_s2 }
   0x4   :  { %p2869_p2 = pnand %p2867_p1, %p2864_p0 }
   0x6   :  { %2872 = shalt.err (!%p2869_p2)
}
   0x7   :  { %s2873_s14 = scalar_lea.vmem %s24_s28, 8192  ;;  %p2878_p4 = scmp.lt.s32.totalorder %s24_s28, %s24_s28 }
   0x8   :  { %p2874_p3 = scmp.ne.s32.totalorder %s24_s28, %s2873_s14  ;;  %p2879_p5 = scmp.lt.s32.totalorder %s2873_s14, %s2873_s14 }
   0xa   :  { %p2880_p6 = por %p2879_p5, %p2878_p4 }
   0xc   :  { %p2881_p7 = pnand %p2880_p6, %p2874_p3 }
   0xe   :  { %2884 = shalt.err (!%p2881_p7)
}
   0xf   :  { %s2888_s15 = smov 512   ;;  %s2889_s16 = smov 32  }
  0x10   :  { %29 = dma.hbm_to_vmem [thread:$0]  %s3564_s2, 8192, %s24_s28, [#allocation3], %s2888_s15, %s2888_s15, %s2889_s16  }
  0x11   :  { %2885 = dma.done.wait [#allocation3], 8192  }
  0x12   :  { %2886 = vsyncadd [#allocation3], 4294959104  ;;  %v2890_v0 = vmov 0.0   ;;  %v52_v1 = vld [vmem:[%s3563_s1 + $0x8] sm:$0xff]  ;;  %v54_v3 = vld [vmem:[%s3563_s1 + $0x18] sm:$0xff]  ;;  %vm81_vm0 = vcmask 130048  }
  0x13   :  { %170 = vmatprep.mubr.f32.mxu0 %v2890_v0  ;;  %283 = vmatprep.mubr.f32.mxu1 %v2890_v0  ;;  %v56_v2 = vld [vmem:[%s3563_s1 + $0x28] sm:$0xff]  ;;  %v58_v5 = vld [vmem:[%s3563_s1 + $0x38] sm:$0xff]  ;;  %v51_v6 = vld [vmem:[%s3563_s1] sm:$0xff]  ;;  %vm2892_vm1 = vmmov 0   ;;  %vm1944_vm2 = vcmask 64512  }
  0x14   :  { %v2097_v4 = vpack.c.bf16 %v56_v2, %v52_v1  ;;  %v55_v7 = vld [vmem:[%s3563_s1 + $0x20] sm:$0xff]  ;;  %v2101_v8 = vpack.c.bf16 %v58_v5, %v54_v3  ;;  %v53_v10 = vld [vmem:[%s3563_s1 + $0x10] sm:$0xff]  ;;  %v333_v14 = vld [vmem:[#allocation2 + $0x8] sm:$0xff] }
  0x15   :  { %v2099_v9 = vpack.c.bf16 %v55_v7, %v51_v6  ;;  %v57_v11 = vld [vmem:[%s3563_s1 + $0x30] sm:$0xff]  ;;  %v43_v12 = vld [vmem:[%s3562_s0] sm:$0xff]  ;;  %v337_v15 = vld [vmem:[#allocation2 + $0x28] sm:$0xff] }
  0x16   :  { %2098 = vmatprep.subr.bf16.mxu0 %v2097_v4  ;;  %v2103_v13 = vpack.c.bf16 %v57_v11, %v53_v10  ;;  %v335_v16 = vld [vmem:[#allocation2 + $0x18] sm:$0xff]  ;;  %2102 = vmatprep.subr.bf16.mxu1 %v2101_v8  ;;  %v2979_v17 = vpack.c.bf16 %v337_v15, %v333_v14  ;;  %v332_v19 = vld [vmem:[#allocation2] sm:$0xff]  ;;  %v334_v23 = vld [vmem:[#allocation2 + $0x10] sm:$0xff] }
  0x17   :  { %2100 = vmatpush1.bf16.msra.mxu0 %v2099_v9  ;;  %v339_v18 = vld [vmem:[#allocation2 + $0x38] sm:$0xff]  ;;  %v336_v20 = vld [vmem:[#allocation2 + $0x20] sm:$0xff]  ;;  %v338_v24 = vld [vmem:[#allocation2 + $0x30] sm:$0xff] }
  0x18   :  { %2104 = vmatpush1.bf16.msra.mxu1 %v2103_v13  ;;  %v2981_v21 = vpack.c.bf16 %v339_v18, %v335_v16  ;;  %v2983_v22 = vpack.c.bf16 %v336_v20, %v332_v19  ;;  %2106 = vmatprep.subr.bf16.mxu0 %v2979_v17  ;;  %v2986_v25 = vpack.c.bf16 %v338_v24, %v334_v23  ;;  %v341_v26 = vld [vmem:[#allocation2 + $0x48] sm:$0xff]  ;;  %v343_v28 = vld [vmem:[#allocation2 + $0x58] sm:$0xff]  ;;  %v340_v31 = vld [vmem:[#allocation2 + $0x40] sm:$0xff] }
  0x19   :  { %v345_v27 = vld [vmem:[#allocation2 + $0x68] sm:$0xff]  ;;  %v347_v30 = vld [vmem:[#allocation2 + $0x78] sm:$0xff]  ;;  %v344_v32 = vld [vmem:[#allocation2 + $0x60] sm:$0xff] }
  0x1a   :  { %1951 = vmatmul.mubr.msk.f32.vlgmr.msra.gmra.mrb[0].mxu0 %vm81_vm0, %v43_v12  ;;  %2138 = vmatprep.subr.bf16.mxu1 %v2981_v21  ;;  %v2990_v29 = vpack.c.bf16 %v345_v27, %v341_v26  ;;  %v44_v33 = vld [vmem:[%s3562_s0 + $0x8] sm:$0xff]  ;;  %v2997_v34 = vpack.c.bf16 %v347_v30, %v343_v28  ;;  %v2999_v35 = vpack.c.bf16 %v344_v32, %v340_v31  ;;  %v342_v36 = vld [vmem:[#allocation2 + $0x50] sm:$0xff]  ;;  %v351_v41 = vld [vmem:[#allocation2 + $0x98] sm:$0xff] }
  0x1b   :  { %1959 = vmatmul.mubr.msk.f32.vlgmr.msra.gmra.mrb[0].mxu1 %vm81_vm0, %v43_v12  ;;  %2108 = vmatpush1.bf16.msra.mxu0 %v2983_v22  ;;  %v346_v37 = vld [vmem:[#allocation2 + $0x70] sm:$0xff]  ;;  %v349_v39 = vld [vmem:[#allocation2 + $0x88] sm:$0xff]  ;;  %v355_v43 = vld [vmem:[#allocation2 + $0xb8] sm:$0xff] }
  0x1c   :  { %2140 = vmatpush1.bf16.msra.mxu1 %v2986_v25  ;;  %176 = vmatprep.mubr.f32.mxu0 %v2890_v0  ;;  %v3003_v38 = vpack.c.bf16 %v346_v37, %v342_v36  ;;  %v353_v40 = vld [vmem:[#allocation2 + $0xa8] sm:$0xff]  ;;  %v348_v44 = vld [vmem:[#allocation2 + $0x80] sm:$0xff]  ;;  %v45_v46 = vld [vmem:[%s3562_s0 + $0x10] sm:$0xff]  ;;  %v3014_v47 = vpack.c.bf16 %v355_v43, %v351_v41 }
  0x1d   :  { %289 = vmatprep.mubr.f32.mxu1 %v2890_v0  ;;  %2110 = vmatprep.subr.bf16.mxu0 %v2990_v29  ;;  %v3007_v42 = vpack.c.bf16 %v353_v40, %v349_v39  ;;  %v352_v45 = vld [vmem:[#allocation2 + $0xa0] sm:$0xff]  ;;  %v350_v48 = vld [vmem:[#allocation2 + $0x90] sm:$0xff]  ;;  %v357_v51 = vld [vmem:[#allocation2 + $0xc8] sm:$0xff] }
  0x1e   :  { %1952 = vmatmul.mubr.msk.f32.gmra.mrb[2].mxu0 %vm81_vm0, %v44_v33  ;;  %2142 = vmatprep.subr.bf16.mxu1 %v2997_v34  ;;  %v354_v49 = vld [vmem:[#allocation2 + $0xb0] sm:$0xff]  ;;  %v3018_v50 = vpack.c.bf16 %v352_v45, %v348_v44  ;;  %v361_v52 = vld [vmem:[#allocation2 + $0xe8] sm:$0xff]  ;;  %v359_v53 = vld [vmem:[#allocation2 + $0xd8] sm:$0xff] }
  0x1f   :  { %1960 = vmatmul.mubr.msk.f32.gmra.mrb[2].mxu1 %vm81_vm0, %v44_v33  ;;  %2112 = vmatpush1.bf16.msra.mxu0 %v2999_v35  ;;  %v3022_v54 = vpack.c.bf16 %v354_v49, %v350_v48  ;;  %v363_v55 = vld [vmem:[#allocation2 + $0xf8] sm:$0xff]  ;;  %v356_v56 = vld [vmem:[#allocation2 + $0xc0] sm:$0xff]  ;;  %v3026_v58 = vpack.c.bf16 %v361_v52, %v357_v51  ;;  %v358_v59 = vld [vmem:[#allocation2 + $0xd0] sm:$0xff] }
  0x20   :  { %2144 = vmatpush1.bf16.msra.mxu1 %v3003_v38  ;;  %182 = vmatprep.mubr.f32.mxu0 %v2890_v0  ;;  %v360_v57 = vld [vmem:[#allocation2 + $0xe0] sm:$0xff]  ;;  %v362_v60 = vld [vmem:[#allocation2 + $0xf0] sm:$0xff]  ;;  %v3030_v61 = vpack.c.bf16 %v363_v55, %v359_v53  ;;  %v365_v62 = vld [vmem:[#allocation2 + $0x108] sm:$0xff] }
  0x21   :  { %295 = vmatprep.mubr.f32.mxu1 %v2890_v0  ;;  %2114 = vmatprep.subr.bf16.mxu0 %v3007_v42  ;;  %v369_v63 = vld [vmem:[#allocation2 + $0x128] sm:$0xff]  ;;  %v46_v1 = vld [vmem:[%s3562_s0 + $0x18] sm:$0xff]  ;;  %v3037_v2 = vpack.c.bf16 %v360_v57, %v356_v56  ;;  %v3041_v5 = vpack.c.bf16 %v362_v60, %v358_v59  ;;  %v364_v6 = vld [vmem:[#allocation2 + $0x100] sm:$0xff] }
  0x22   :  { %1953 = vmatmul.mubr.msk.f32.gmra.mrb[4].mxu0 %vm81_vm0, %v45_v46  ;;  %2146 = vmatprep.subr.bf16.mxu1 %v3014_v47  ;;  %v367_v3 = vld [vmem:[#allocation2 + $0x118] sm:$0xff]  ;;  %v368_v7 = vld [vmem:[#allocation2 + $0x120] sm:$0xff]  ;;  %v3045_v8 = vpack.c.bf16 %v369_v63, %v365_v62  ;;  %v366_v9 = vld [vmem:[#allocation2 + $0x110] sm:$0xff] }
  0x23   :  { %1961 = vmatmul.mubr.msk.f32.gmra.mrb[4].mxu1 %vm81_vm0, %v45_v46  ;;  %2116 = vmatpush1.bf16.msra.mxu0 %v3018_v50  ;;  %v371_v4 = vld [vmem:[#allocation2 + $0x138] sm:$0xff]  ;;  %v370_v10 = vld [vmem:[#allocation2 + $0x130] sm:$0xff]  ;;  %v373_v12 = vld [vmem:[#allocation2 + $0x148] sm:$0xff]  ;;  %v3056_v15 = vpack.c.bf16 %v368_v7, %v364_v6  ;;  %v61_v7 = vlaneseq }
  0x24   :  { %2148 = vmatpush1.bf16.msra.mxu1 %v3022_v54  ;;  %188 = vmatprep.mubr.f32.mxu0 %v2890_v0  ;;  %v3049_v11 = vpack.c.bf16 %v371_v4, %v367_v3  ;;  %v377_v13 = vld [vmem:[#allocation2 + $0x168] sm:$0xff]  ;;  %v47_v14 = vld [vmem:[%s3562_s0 + $0x20] sm:$0xff]  ;;  %v375_v16 = vld [vmem:[#allocation2 + $0x158] sm:$0xff]  ;;  %v3060_v19 = vpack.c.bf16 %v370_v10, %v366_v9 }
  0x25   :  { %301 = vmatprep.mubr.f32.mxu1 %v2890_v0  ;;  %2118 = vmatprep.subr.bf16.mxu0 %v3026_v58  ;;  %v379_v18 = vld [vmem:[#allocation2 + $0x178] sm:$0xff]  ;;  %v372_v20 = vld [vmem:[#allocation2 + $0x140] sm:$0xff]  ;;  %v3064_v24 = vpack.c.bf16 %v377_v13, %v373_v12  ;;  %v374_v26 = vld [vmem:[#allocation2 + $0x150] sm:$0xff]  ;;  %v62_v9 = vshrl.u32 %v61_v7, 7 }
  0x26   :  { %1954 = vmatmul.mubr.msk.f32.gmra.mrb[6].mxu0 %vm81_vm0, %v46_v1  ;;  %2150 = vmatprep.subr.bf16.mxu1 %v3030_v61  ;;  %v376_v23 = vld [vmem:[#allocation2 + $0x160] sm:$0xff]  ;;  %v378_v27 = vld [vmem:[#allocation2 + $0x170] sm:$0xff]  ;;  %v3068_v28 = vpack.c.bf16 %v379_v18, %v375_v16  ;;  %v381_v30 = vld [vmem:[#allocation2 + $0x188] sm:$0xff] }
  0x27   :  { %1962 = vmatmul.mubr.msk.f32.gmra.mrb[6].mxu1 %vm81_vm0, %v46_v1  ;;  %2120 = vmatpush1.bf16.msra.mxu0 %v3037_v2  ;;  %v385_v31 = vld [vmem:[#allocation2 + $0x1a8] sm:$0xff]  ;;  %v3075_v33 = vpack.c.bf16 %v376_v23, %v372_v20  ;;  %v383_v36 = vld [vmem:[#allocation2 + $0x198] sm:$0xff]  ;;  %v3079_v39 = vpack.c.bf16 %v378_v27, %v374_v26  ;;  %v380_v40 = vld [vmem:[#allocation2 + $0x180] sm:$0xff]  ;;  %v63_v10 = vsub.s32 0, %v62_v9  ;;  %v67_v13 = vsub.s32 1, %v62_v9 }
  0x28   :  { %2152 = vmatpush1.bf16.msra.mxu1 %v3041_v5  ;;  %194 = vmatprep.mubr.f32.mxu0 %v2890_v0  ;;  %v48_v32 = vld [vmem:[%s3562_s0 + $0x28] sm:$0xff]  ;;  %v387_v37 = vld [vmem:[#allocation2 + $0x1b8] sm:$0xff]  ;;  %v384_v41 = vld [vmem:[#allocation2 + $0x1a0] sm:$0xff]  ;;  %v3083_v43 = vpack.c.bf16 %v385_v31, %v381_v30  ;;  %v75_v20 = vsub.s32 3, %v62_v9 }
  0x29   :  { %307 = vmatprep.mubr.f32.mxu1 %v2890_v0  ;;  %2122 = vmatprep.subr.bf16.mxu0 %v3045_v8  ;;  %v382_v44 = vld [vmem:[#allocation2 + $0x190] sm:$0xff]  ;;  %v3087_v46 = vpack.c.bf16 %v387_v37, %v383_v36  ;;  %v389_v48 = vld [vmem:[#allocation2 + $0x1c8] sm:$0xff]  ;;  %v3094_v52 = vpack.c.bf16 %v384_v41, %v380_v40  ;;  %v391_v53 = vld [vmem:[#allocation2 + $0x1d8] sm:$0xff]  ;;  %v71_v40 = vsub.s32 2, %v62_v9 }
  0x2a   :  { %1955 = vmatmul.mubr.msk.f32.gmra.mrb[8].mxu0 %vm81_vm0, %v47_v14  ;;  %2154 = vmatprep.subr.bf16.mxu1 %v3049_v11  ;;  %v386_v45 = vld [vmem:[#allocation2 + $0x1b0] sm:$0xff]  ;;  %v393_v49 = vld [vmem:[#allocation2 + $0x1e8] sm:$0xff]  ;;  %v395_v55 = vld [vmem:[#allocation2 + $0x1f8] sm:$0xff] }
  0x2b   :  { %1963 = vmatmul.mubr.msk.f32.gmra.mrb[8].mxu1 %vm81_vm0, %v47_v14  ;;  %2124 = vmatpush1.bf16.msra.mxu0 %v3056_v15  ;;  %v49_v51 = vld [vmem:[%s3562_s0 + $0x30] sm:$0xff]  ;;  %v3098_v56 = vpack.c.bf16 %v386_v45, %v382_v44  ;;  %v388_v57 = vld [vmem:[#allocation2 + $0x1c0] sm:$0xff]  ;;  %v3102_v60 = vpack.c.bf16 %v393_v49, %v389_v48  ;;  %v3106_v1 = vpack.c.bf16 %v395_v55, %v391_v53  ;;  %v50_v3 = vld [vmem:[%s3562_s0 + $0x38] sm:$0xff] }
  0x2c   :  { %2156 = vmatpush1.bf16.msra.mxu1 %v3060_v19  ;;  %200 = vmatprep.mubr.f32.mxu0 %v2890_v0  ;;  %v392_v59 = vld [vmem:[#allocation2 + $0x1e0] sm:$0xff]  ;;  %v390_v62 = vld [vmem:[#allocation2 + $0x1d0] sm:$0xff] }
  0x2d   :  { %313 = vmatprep.mubr.f32.mxu1 %v2890_v0  ;;  %2126 = vmatprep.subr.bf16.mxu0 %v3064_v24  ;;  %v394_v63 = vld [vmem:[#allocation2 + $0x1f0] sm:$0xff]  ;;  %v3113_v4 = vpack.c.bf16 %v392_v59, %v388_v57  ;;  %v59_v12 = vld [vmem:[%s3565_s3] sm:$0xf] }
  0x2e   :  { %1956 = vmatmul.mubr.msk.f32.gmra.mrb[10].mxu0 %vm81_vm0, %v48_v32  ;;  %2158 = vmatprep.subr.bf16.mxu1 %v3068_v28  ;;  %v3117_v6 = vpack.c.bf16 %v394_v63, %v390_v62  ;;  %v3169_v14 = vrot.slane %v59_v12, %v63_v10  ;;  %v3171_v16 = vrot.slane %v59_v12, %v67_v13 }
  0x2f   :  { %1964 = vmatmul.mubr.msk.f32.gmra.mrb[10].mxu1 %vm81_vm0, %v48_v32  ;;  %2128 = vmatpush1.bf16.msra.mxu0 %v3075_v33  ;;  %v3175_v37 = vrot.slane %v59_v12, %v75_v20  ;;  %v3178_v44 = vrot.slane %v59_v12, %v71_v40 }
  0x30   :  { %2160 = vmatpush1.bf16.msra.mxu1 %v3079_v39  ;;  %206 = vmatprep.mubr.f32.mxu0 %v2890_v0 }
  0x31   :  { %319 = vmatprep.mubr.f32.mxu1 %v2890_v0  ;;  %2130 = vmatprep.subr.bf16.mxu0 %v3083_v43 }
  0x32   :  { %1957 = vmatmul.mubr.msk.f32.gmra.mrb[12].mxu0 %vm81_vm0, %v49_v51  ;;  %2162 = vmatprep.subr.bf16.mxu1 %v3087_v46 }
  0x33   :  { %1965 = vmatmul.mubr.msk.f32.gmra.mrb[12].mxu1 %vm81_vm0, %v49_v51  ;;  %2132 = vmatpush1.bf16.msra.mxu0 %v3094_v52 }
  0x34   :  { %2164 = vmatpush1.bf16.msra.mxu1 %v3098_v56  ;;  %212 = vmatprep.mubr.f32.mxu0 %v2890_v0 }
  0x35   :  { %325 = vmatprep.mubr.f32.mxu1 %v2890_v0  ;;  %2134 = vmatprep.subr.bf16.mxu0 %v3102_v60 }
  0x36   :  { %1958 = vmatmul.mubr.msk.f32.gmra.mrb[14].mxu0 %vm81_vm0, %v50_v3  ;;  %2166 = vmatprep.subr.bf16.mxu1 %v3106_v1 }
  0x37   :  { %1966 = vmatmul.mubr.msk.f32.gmra.mrb[14].mxu1 %vm81_vm0, %v50_v3  ;;  %2136 = vmatpush1.bf16.msra.mxu0 %v3113_v4 }
  0x38   :  { %2168 = vmatpush1.bf16.msra.mxu1 %v3117_v6  ;;  %460 = vmatprep.mubr.f32.mxu0 %v2890_v0 }
  0x39   :  { %531 = vmatprep.mubr.f32.mxu1 %v2890_v0  ;;  %2170 = vmatprep.subr.bf16.mxu0 %v2979_v17 }
  0x3a   :  { %461 = vmatmul.mubr.f32.vlgmr.msra.gmra.mrb[0].mxu0 %v2890_v0  ;;  %2202 = vmatprep.subr.bf16.mxu1 %v2981_v21 }
  0x3b   :  { %532 = vmatmul.mubr.f32.vlgmr.msra.gmra.mrb[0].mxu1 %v2890_v0  ;;  %2172 = vmatpush1.bf16.msra.mxu0 %v2983_v22 }
  0x3c   :  { %2204 = vmatpush1.bf16.msra.mxu1 %v2986_v25  ;;  %2174 = vmatprep.subr.bf16.mxu0 %v2990_v29 }
  0x3d   :  { %2206 = vmatprep.subr.bf16.mxu1 %v2997_v34  ;;  %630 = vmatprep.mubr.f32.mxu0 %v2890_v0 }
  0x3e   :  { %701 = vmatprep.mubr.f32.mxu1 %v2890_v0 }
  0x3f   :  { %2176 = vmatpush1.bf16.msra.mxu0 %v2999_v35 }
  0x40   :  { %2208 = vmatpush1.bf16.msra.mxu1 %v3003_v38  ;;  %2178 = vmatprep.subr.bf16.mxu0 %v3007_v42 }
  0x41   :  { %2210 = vmatprep.subr.bf16.mxu1 %v3014_v47 }
  0x43   :  { %2180 = vmatpush1.bf16.msra.mxu0 %v3018_v50 }
  0x44   :  { %2212 = vmatpush1.bf16.msra.mxu1 %v3022_v54  ;;  %2182 = vmatprep.subr.bf16.mxu0 %v3026_v58 }
  0x45   :  { %2214 = vmatprep.subr.bf16.mxu1 %v3030_v61 }
  0x47   :  { %2184 = vmatpush1.bf16.msra.mxu0 %v3037_v2 }
  0x48   :  { %2216 = vmatpush1.bf16.msra.mxu1 %v3041_v5  ;;  %2186 = vmatprep.subr.bf16.mxu0 %v3045_v8 }
  0x49   :  { %2218 = vmatprep.subr.bf16.mxu1 %v3049_v11 }
  0x4b   :  { %2188 = vmatpush1.bf16.msra.mxu0 %v3056_v15 }
  0x4c   :  { %2220 = vmatpush1.bf16.msra.mxu1 %v3060_v19  ;;  %2190 = vmatprep.subr.bf16.mxu0 %v3064_v24 }
  0x4d   :  { %2222 = vmatprep.subr.bf16.mxu1 %v3068_v28 }
  0x4f   :  { %2192 = vmatpush1.bf16.msra.mxu0 %v3075_v33 }
  0x50   :  { %2224 = vmatpush1.bf16.msra.mxu1 %v3079_v39  ;;  %2194 = vmatprep.subr.bf16.mxu0 %v3083_v43 }
  0x51   :  { %2226 = vmatprep.subr.bf16.mxu1 %v3087_v46 }
  0x53   :  { %2196 = vmatpush1.bf16.msra.mxu0 %v3094_v52 }
  0x54   :  { %2228 = vmatpush1.bf16.msra.mxu1 %v3098_v56  ;;  %2198 = vmatprep.subr.bf16.mxu0 %v3102_v60 }
  0x55   :  { %2230 = vmatprep.subr.bf16.mxu1 %v3106_v1 }
  0x57   :  { %2200 = vmatpush1.bf16.msra.mxu0 %v3113_v4 }
  0x58   :  { %2232 = vmatpush1.bf16.msra.mxu1 %v3117_v6  ;;  %2234 = vmatprep.subr.bf16.mxu0 %v2979_v17 }
  0x59   :  { %2266 = vmatprep.subr.bf16.mxu1 %v2981_v21 }
 0x10d   :  { %v462_v18 = vpop.f32.mrb[0].mxu0 }
 0x10e   :  { %v2665_v23 = vadd.f32 %v462_v18, %v3169_v14  ;;  %v533_v26 = vpop.f32.mrb[0].mxu1  ;;  %v464_v27 = vpop.f32.mrb[1].mxu0 }
 0x10f   :  { %v2666_v30 = vadd.f32 %v464_v27, %v3171_v16  ;;  %v535_v31 = vpop.f32.mrb[1].mxu1  ;;  %v2681_v48 = vadd.f32 %v533_v26, %v3178_v44 }
 0x110   :  { %v1967_v32 = vmul.f32 -1.442695, %v2665_v23  ;;  %v2682_v41 = vadd.f32 %v535_v31, %v3175_v37 }
 0x111   :  { %v1968_v36 = vmul.f32 -1.442695, %v2666_v30 }
 0x112   :  { %2735 = vpow2.f32 %v1967_v32  ;;  %v1969_v45 = vmul.f32 -1.442695, %v2682_v41 }
 0x113   :  { %2737 = vpow2.f32 %v1968_v36 }
 0x114   :  { %2739 = vpow2.f32 %v1969_v45 }
 0x115   :  { %2741 = vtanh.f32 %v2681_v48 }
 0x11c   :  { %v2736_v49 = vpop.eup %2735 }
 0x11d   :  { %v2738_v51 = vpop.eup %2737  ;;  %v545_v53 = vadd.f32 1.0, %v2736_v49 }
 0x11e   :  { %v551_v55 = vadd.f32 1.0, %v2738_v51  ;;  %v2740_v57 = vpop.eup %2739 }
 0x11f   :  { %2743 = vrcp.f32 %v545_v53  ;;  %v2742_v59 = vpop.eup %2741  ;;  %v558_v7 = vadd.f32 1.0, %v2740_v57 }
 0x120   :  { %2745 = vrcp.f32 %v551_v55 }
 0x121   :  { %2747 = vrcp.f32 %v558_v7 }
 0x129   :  { %v2744_v62 = vpop.eup %2743 }
 0x12a   :  { %v2746_v63 = vpop.eup %2745  ;;  %v562_v3 = vmul.f32 %v2744_v62, %v2742_v59 }
 0x12b   :  { %v561_v9 = vmul.f32 0.0, %v2746_v63  ;;  %v2748_v12 = vpop.eup %2747 }
 0x12d   :  { %v3181_v10 = vadd.f32 %v562_v3, %v561_v9 }
 0x12f   :  { %2749 = vtanh.f32 %v3181_v10 }
 0x139   :  { %v2750_v13 = vpop.eup %2749 }
 0x13a   :  { %v565_v18 = vmul.f32 %v2750_v13, %v2748_v12 }
 0x13c   :  { %631 = vmatmul.mubr.f32.vlgmr.msra.gmra.mrb[2].mxu0 %v565_v18  ;;  %702 = vmatmul.mubr.f32.vlgmr.msra.gmra.mrb[2].mxu1 %v565_v18 }
 0x13d   :  { %2236 = vmatpush1.bf16.msra.mxu0 %v2983_v22  ;;  %2268 = vmatpush1.bf16.msra.mxu1 %v2986_v25 }
 0x13e   :  { %2238 = vmatprep.subr.bf16.mxu0 %v2990_v29  ;;  %2270 = vmatprep.subr.bf16.mxu1 %v2997_v34 }
 0x13f   :  { %800 = vmatprep.mubr.f32.mxu0 %v2890_v0  ;;  %871 = vmatprep.mubr.f32.mxu1 %v2890_v0 }
 0x141   :  { %2240 = vmatpush1.bf16.msra.mxu0 %v2999_v35  ;;  %2272 = vmatpush1.bf16.msra.mxu1 %v3003_v38 }
 0x142   :  { %2242 = vmatprep.subr.bf16.mxu0 %v3007_v42  ;;  %2274 = vmatprep.subr.bf16.mxu1 %v3014_v47 }
 0x145   :  { %2244 = vmatpush1.bf16.msra.mxu0 %v3018_v50  ;;  %2276 = vmatpush1.bf16.msra.mxu1 %v3022_v54 }
 0x146   :  { %2246 = vmatprep.subr.bf16.mxu0 %v3026_v58  ;;  %2278 = vmatprep.subr.bf16.mxu1 %v3030_v61 }
 0x149   :  { %2248 = vmatpush1.bf16.msra.mxu0 %v3037_v2  ;;  %2280 = vmatpush1.bf16.msra.mxu1 %v3041_v5 }
 0x14a   :  { %2250 = vmatprep.subr.bf16.mxu0 %v3045_v8  ;;  %2282 = vmatprep.subr.bf16.mxu1 %v3049_v11 }
 0x14d   :  { %2252 = vmatpush1.bf16.msra.mxu0 %v3056_v15  ;;  %2284 = vmatpush1.bf16.msra.mxu1 %v3060_v19 }
 0x14e   :  { %2254 = vmatprep.subr.bf16.mxu0 %v3064_v24  ;;  %2286 = vmatprep.subr.bf16.mxu1 %v3068_v28 }
 0x151   :  { %2256 = vmatpush1.bf16.msra.mxu0 %v3075_v33  ;;  %2288 = vmatpush1.bf16.msra.mxu1 %v3079_v39 }
 0x152   :  { %2258 = vmatprep.subr.bf16.mxu0 %v3083_v43  ;;  %2290 = vmatprep.subr.bf16.mxu1 %v3087_v46 }
 0x155   :  { %2260 = vmatpush1.bf16.msra.mxu0 %v3094_v52  ;;  %2292 = vmatpush1.bf16.msra.mxu1 %v3098_v56 }
 0x156   :  { %2262 = vmatprep.subr.bf16.mxu0 %v3102_v60  ;;  %2294 = vmatprep.subr.bf16.mxu1 %v3106_v1 }
 0x159   :  { %2264 = vmatpush1.bf16.msra.mxu0 %v3113_v4  ;;  %2296 = vmatpush1.bf16.msra.mxu1 %v3117_v6 }
 0x15a   :  { %2298 = vmatprep.subr.bf16.mxu0 %v2979_v17  ;;  %2330 = vmatprep.subr.bf16.mxu1 %v2981_v21 }
 0x20f   :  { %v632_v20 = vpop.f32.mrb[2].mxu0  ;;  %v703_v23 = vpop.f32.mrb[2].mxu1 }
 0x210   :  { %v2667_v26 = vadd.f32 %v632_v20, %v3169_v14  ;;  %v634_v27 = vpop.f32.mrb[3].mxu0  ;;  %v705_v30 = vpop.f32.mrb[3].mxu1  ;;  %v2683_v45 = vadd.f32 %v703_v23, %v3178_v44 }
 0x211   :  { %v2668_v31 = vadd.f32 %v634_v27, %v3171_v16  ;;  %v2684_v40 = vadd.f32 %v705_v30, %v3175_v37 }
 0x212   :  { %v1970_v32 = vmul.f32 -1.442695, %v2667_v26 }
 0x213   :  { %v1971_v36 = vmul.f32 -1.442695, %v2668_v31  ;;  %v1972_v41 = vmul.f32 -1.442695, %v2684_v40 }
 0x214   :  { %2751 = vpow2.f32 %v1970_v32 }
 0x215   :  { %2753 = vpow2.f32 %v1971_v36 }
 0x216   :  { %2755 = vpow2.f32 %v1972_v41 }
 0x217   :  { %2757 = vtanh.f32 %v2683_v45 }
 0x21e   :  { %v2752_v48 = vpop.eup %2751 }
 0x21f   :  { %v2754_v49 = vpop.eup %2753  ;;  %v715_v51 = vadd.f32 1.0, %v2752_v48 }
 0x220   :  { %v721_v53 = vadd.f32 1.0, %v2754_v49  ;;  %v2756_v55 = vpop.eup %2755 }
 0x221   :  { %2759 = vrcp.f32 %v715_v51  ;;  %v2758_v57 = vpop.eup %2757  ;;  %v728_v3 = vadd.f32 1.0, %v2756_v55 }
 0x222   :  { %2761 = vrcp.f32 %v721_v53 }
 0x223   :  { %2763 = vrcp.f32 %v728_v3 }
 0x22b   :  { %v2760_v59 = vpop.eup %2759 }
 0x22c   :  { %v2762_v62 = vpop.eup %2761  ;;  %v732_v63 = vmul.f32 %v2760_v59, %v2758_v57 }
 0x22d   :  { %v731_v7 = vmul.f32 %v2762_v62, %v3181_v10  ;;  %v2764_v12 = vpop.eup %2763 }
 0x22f   :  { %v3223_v9 = vadd.f32 %v732_v63, %v731_v7 }
 0x231   :  { %2765 = vtanh.f32 %v3223_v9 }
 0x23b   :  { %v2766_v13 = vpop.eup %2765 }
 0x23c   :  { %v735_v18 = vmul.f32 %v2766_v13, %v2764_v12 }
 0x23e   :  { %801 = vmatmul.mubr.f32.vlgmr.msra.gmra.mrb[4].mxu0 %v735_v18  ;;  %872 = vmatmul.mubr.f32.vlgmr.msra.gmra.mrb[4].mxu1 %v735_v18 }
 0x23f   :  { %2300 = vmatpush1.bf16.msra.mxu0 %v2983_v22  ;;  %2332 = vmatpush1.bf16.msra.mxu1 %v2986_v25 }
 0x240   :  { %2302 = vmatprep.subr.bf16.mxu0 %v2990_v29  ;;  %2334 = vmatprep.subr.bf16.mxu1 %v2997_v34 }
 0x241   :  { %970 = vmatprep.mubr.f32.mxu0 %v2890_v0  ;;  %1041 = vmatprep.mubr.f32.mxu1 %v2890_v0 }
 0x243   :  { %2304 = vmatpush1.bf16.msra.mxu0 %v2999_v35  ;;  %2336 = vmatpush1.bf16.msra.mxu1 %v3003_v38 }
 0x244   :  { %2306 = vmatprep.subr.bf16.mxu0 %v3007_v42  ;;  %2338 = vmatprep.subr.bf16.mxu1 %v3014_v47 }
 0x247   :  { %2308 = vmatpush1.bf16.msra.mxu0 %v3018_v50  ;;  %2340 = vmatpush1.bf16.msra.mxu1 %v3022_v54 }
 0x248   :  { %2310 = vmatprep.subr.bf16.mxu0 %v3026_v58  ;;  %2342 = vmatprep.subr.bf16.mxu1 %v3030_v61 }
 0x24b   :  { %2312 = vmatpush1.bf16.msra.mxu0 %v3037_v2  ;;  %2344 = vmatpush1.bf16.msra.mxu1 %v3041_v5 }
 0x24c   :  { %2314 = vmatprep.subr.bf16.mxu0 %v3045_v8  ;;  %2346 = vmatprep.subr.bf16.mxu1 %v3049_v11 }
 0x24f   :  { %2316 = vmatpush1.bf16.msra.mxu0 %v3056_v15  ;;  %2348 = vmatpush1.bf16.msra.mxu1 %v3060_v19 }
 0x250   :  { %2318 = vmatprep.subr.bf16.mxu0 %v3064_v24  ;;  %2350 = vmatprep.subr.bf16.mxu1 %v3068_v28 }
 0x253   :  { %2320 = vmatpush1.bf16.msra.mxu0 %v3075_v33  ;;  %2352 = vmatpush1.bf16.msra.mxu1 %v3079_v39 }
 0x254   :  { %2322 = vmatprep.subr.bf16.mxu0 %v3083_v43  ;;  %2354 = vmatprep.subr.bf16.mxu1 %v3087_v46 }
 0x257   :  { %2324 = vmatpush1.bf16.msra.mxu0 %v3094_v52  ;;  %2356 = vmatpush1.bf16.msra.mxu1 %v3098_v56 }
 0x258   :  { %2326 = vmatprep.subr.bf16.mxu0 %v3102_v60  ;;  %2358 = vmatprep.subr.bf16.mxu1 %v3106_v1 }
 0x25b   :  { %2328 = vmatpush1.bf16.msra.mxu0 %v3113_v4  ;;  %2360 = vmatpush1.bf16.msra.mxu1 %v3117_v6 }
 0x25c   :  { %2362 = vmatprep.subr.bf16.mxu0 %v2979_v17  ;;  %2394 = vmatprep.subr.bf16.mxu1 %v2981_v21 }
 0x311   :  { %v802_v10 = vpop.f32.mrb[4].mxu0  ;;  %v873_v20 = vpop.f32.mrb[4].mxu1 }
 0x312   :  { %v2669_v23 = vadd.f32 %v802_v10, %v3169_v14  ;;  %v804_v26 = vpop.f32.mrb[5].mxu0  ;;  %v875_v27 = vpop.f32.mrb[5].mxu1  ;;  %v2685_v41 = vadd.f32 %v873_v20, %v3178_v44 }
 0x313   :  { %v2670_v30 = vadd.f32 %v804_v26, %v3171_v16  ;;  %v2686_v36 = vadd.f32 %v875_v27, %v3175_v37 }
 0x314   :  { %v1973_v31 = vmul.f32 -1.442695, %v2669_v23 }
 0x315   :  { %v1974_v32 = vmul.f32 -1.442695, %v2670_v30  ;;  %v1975_v40 = vmul.f32 -1.442695, %v2686_v36 }
 0x316   :  { %2767 = vpow2.f32 %v1973_v31 }
 0x317   :  { %2769 = vpow2.f32 %v1974_v32 }
 0x318   :  { %2771 = vpow2.f32 %v1975_v40 }
 0x319   :  { %2773 = vtanh.f32 %v2685_v41 }
 0x320   :  { %v2768_v45 = vpop.eup %2767 }
 0x321   :  { %v2770_v48 = vpop.eup %2769  ;;  %v885_v49 = vadd.f32 1.0, %v2768_v45 }
 0x322   :  { %v891_v51 = vadd.f32 1.0, %v2770_v48  ;;  %v2772_v53 = vpop.eup %2771 }
 0x323   :  { %2775 = vrcp.f32 %v885_v49  ;;  %v2774_v55 = vpop.eup %2773  ;;  %v898_v63 = vadd.f32 1.0, %v2772_v53 }
 0x324   :  { %2777 = vrcp.f32 %v891_v51 }
 0x325   :  { %2779 = vrcp.f32 %v898_v63 }
 0x32d   :  { %v2776_v57 = vpop.eup %2775 }
 0x32e   :  { %v2778_v59 = vpop.eup %2777  ;;  %v902_v62 = vmul.f32 %v2776_v57, %v2774_v55 }
 0x32f   :  { %v901_v3 = vmul.f32 %v2778_v59, %v3223_v9  ;;  %v2780_v12 = vpop.eup %2779 }
 0x331   :  { %v3265_v7 = vadd.f32 %v902_v62, %v901_v3 }
 0x333   :  { %2781 = vtanh.f32 %v3265_v7 }
 0x33d   :  { %v2782_v13 = vpop.eup %2781 }
 0x33e   :  { %v905_v18 = vmul.f32 %v2782_v13, %v2780_v12 }
 0x340   :  { %971 = vmatmul.mubr.f32.vlgmr.msra.gmra.mrb[6].mxu0 %v905_v18  ;;  %1042 = vmatmul.mubr.f32.vlgmr.msra.gmra.mrb[6].mxu1 %v905_v18 }
 0x341   :  { %2364 = vmatpush1.bf16.msra.mxu0 %v2983_v22  ;;  %2396 = vmatpush1.bf16.msra.mxu1 %v2986_v25 }
 0x342   :  { %2366 = vmatprep.subr.bf16.mxu0 %v2990_v29  ;;  %2398 = vmatprep.subr.bf16.mxu1 %v2997_v34 }
 0x343   :  { %1140 = vmatprep.mubr.f32.mxu0 %v2890_v0  ;;  %1211 = vmatprep.mubr.f32.mxu1 %v2890_v0 }
 0x345   :  { %2368 = vmatpush1.bf16.msra.mxu0 %v2999_v35  ;;  %2400 = vmatpush1.bf16.msra.mxu1 %v3003_v38 }
 0x346   :  { %2370 = vmatprep.subr.bf16.mxu0 %v3007_v42  ;;  %2402 = vmatprep.subr.bf16.mxu1 %v3014_v47 }
 0x349   :  { %2372 = vmatpush1.bf16.msra.mxu0 %v3018_v50  ;;  %2404 = vmatpush1.bf16.msra.mxu1 %v3022_v54 }
 0x34a   :  { %2374 = vmatprep.subr.bf16.mxu0 %v3026_v58  ;;  %2406 = vmatprep.subr.bf16.mxu1 %v3030_v61 }
 0x34d   :  { %2376 = vmatpush1.bf16.msra.mxu0 %v3037_v2  ;;  %2408 = vmatpush1.bf16.msra.mxu1 %v3041_v5 }
 0x34e   :  { %2378 = vmatprep.subr.bf16.mxu0 %v3045_v8  ;;  %2410 = vmatprep.subr.bf16.mxu1 %v3049_v11 }
 0x351   :  { %2380 = vmatpush1.bf16.msra.mxu0 %v3056_v15  ;;  %2412 = vmatpush1.bf16.msra.mxu1 %v3060_v19 }
 0x352   :  { %2382 = vmatprep.subr.bf16.mxu0 %v3064_v24  ;;  %2414 = vmatprep.subr.bf16.mxu1 %v3068_v28 }
 0x355   :  { %2384 = vmatpush1.bf16.msra.mxu0 %v3075_v33  ;;  %2416 = vmatpush1.bf16.msra.mxu1 %v3079_v39 }
 0x356   :  { %2386 = vmatprep.subr.bf16.mxu0 %v3083_v43  ;;  %2418 = vmatprep.subr.bf16.mxu1 %v3087_v46 }
 0x359   :  { %2388 = vmatpush1.bf16.msra.mxu0 %v3094_v52  ;;  %2420 = vmatpush1.bf16.msra.mxu1 %v3098_v56 }
 0x35a   :  { %2390 = vmatprep.subr.bf16.mxu0 %v3102_v60  ;;  %2422 = vmatprep.subr.bf16.mxu1 %v3106_v1 }
 0x35d   :  { %2392 = vmatpush1.bf16.msra.mxu0 %v3113_v4  ;;  %2424 = vmatpush1.bf16.msra.mxu1 %v3117_v6 }
 0x35e   :  { %2426 = vmatprep.subr.bf16.mxu0 %v2979_v17  ;;  %2458 = vmatprep.subr.bf16.mxu1 %v2981_v21 }
 0x413   :  { %v972_v9 = vpop.f32.mrb[6].mxu0  ;;  %v1043_v10 = vpop.f32.mrb[6].mxu1 }
 0x414   :  { %v2671_v20 = vadd.f32 %v972_v9, %v3169_v14  ;;  %v974_v23 = vpop.f32.mrb[7].mxu0  ;;  %v1045_v26 = vpop.f32.mrb[7].mxu1  ;;  %v2687_v40 = vadd.f32 %v1043_v10, %v3178_v44 }
 0x415   :  { %v2672_v27 = vadd.f32 %v974_v23, %v3171_v16  ;;  %v2688_v32 = vadd.f32 %v1045_v26, %v3175_v37 }
 0x416   :  { %v1976_v30 = vmul.f32 -1.442695, %v2671_v20 }
 0x417   :  { %v1977_v31 = vmul.f32 -1.442695, %v2672_v27  ;;  %v1978_v36 = vmul.f32 -1.442695, %v2688_v32 }
 0x418   :  { %2783 = vpow2.f32 %v1976_v30 }
 0x419   :  { %2785 = vpow2.f32 %v1977_v31 }
 0x41a   :  { %2787 = vpow2.f32 %v1978_v36 }
 0x41b   :  { %2789 = vtanh.f32 %v2687_v40 }
 0x422   :  { %v2784_v41 = vpop.eup %2783 }
 0x423   :  { %v2786_v45 = vpop.eup %2785  ;;  %v1055_v48 = vadd.f32 1.0, %v2784_v41 }
 0x424   :  { %v1061_v49 = vadd.f32 1.0, %v2786_v45  ;;  %v2788_v51 = vpop.eup %2787 }
 0x425   :  { %2791 = vrcp.f32 %v1055_v48  ;;  %v2790_v53 = vpop.eup %2789  ;;  %v1068_v62 = vadd.f32 1.0, %v2788_v51 }
 0x426   :  { %2793 = vrcp.f32 %v1061_v49 }
 0x427   :  { %2795 = vrcp.f32 %v1068_v62 }
 0x42f   :  { %v2792_v55 = vpop.eup %2791 }
 0x430   :  { %v2794_v57 = vpop.eup %2793  ;;  %v1072_v59 = vmul.f32 %v2792_v55, %v2790_v53 }
 0x431   :  { %v1071_v63 = vmul.f32 %v2794_v57, %v3265_v7  ;;  %v2796_v12 = vpop.eup %2795 }
 0x433   :  { %v3307_v3 = vadd.f32 %v1072_v59, %v1071_v63 }
 0x435   :  { %2797 = vtanh.f32 %v3307_v3 }
 0x43f   :  { %v2798_v13 = vpop.eup %2797 }
 0x440   :  { %v1075_v18 = vmul.f32 %v2798_v13, %v2796_v12 }
 0x442   :  { %1141 = vmatmul.mubr.f32.vlgmr.msra.gmra.mrb[8].mxu0 %v1075_v18  ;;  %1212 = vmatmul.mubr.f32.vlgmr.msra.gmra.mrb[8].mxu1 %v1075_v18 }
 0x443   :  { %2428 = vmatpush1.bf16.msra.mxu0 %v2983_v22  ;;  %2460 = vmatpush1.bf16.msra.mxu1 %v2986_v25 }
 0x444   :  { %2430 = vmatprep.subr.bf16.mxu0 %v2990_v29  ;;  %2462 = vmatprep.subr.bf16.mxu1 %v2997_v34 }
 0x445   :  { %1310 = vmatprep.mubr.f32.mxu0 %v2890_v0  ;;  %1381 = vmatprep.mubr.f32.mxu1 %v2890_v0 }
 0x447   :  { %2432 = vmatpush1.bf16.msra.mxu0 %v2999_v35  ;;  %2464 = vmatpush1.bf16.msra.mxu1 %v3003_v38 }
 0x448   :  { %2434 = vmatprep.subr.bf16.mxu0 %v3007_v42  ;;  %2466 = vmatprep.subr.bf16.mxu1 %v3014_v47 }
 0x44b   :  { %2436 = vmatpush1.bf16.msra.mxu0 %v3018_v50  ;;  %2468 = vmatpush1.bf16.msra.mxu1 %v3022_v54 }
 0x44c   :  { %2438 = vmatprep.subr.bf16.mxu0 %v3026_v58  ;;  %2470 = vmatprep.subr.bf16.mxu1 %v3030_v61 }
 0x44f   :  { %2440 = vmatpush1.bf16.msra.mxu0 %v3037_v2  ;;  %2472 = vmatpush1.bf16.msra.mxu1 %v3041_v5 }
 0x450   :  { %2442 = vmatprep.subr.bf16.mxu0 %v3045_v8  ;;  %2474 = vmatprep.subr.bf16.mxu1 %v3049_v11 }
 0x453   :  { %2444 = vmatpush1.bf16.msra.mxu0 %v3056_v15  ;;  %2476 = vmatpush1.bf16.msra.mxu1 %v3060_v19 }
 0x454   :  { %2446 = vmatprep.subr.bf16.mxu0 %v3064_v24  ;;  %2478 = vmatprep.subr.bf16.mxu1 %v3068_v28 }
 0x457   :  { %2448 = vmatpush1.bf16.msra.mxu0 %v3075_v33  ;;  %2480 = vmatpush1.bf16.msra.mxu1 %v3079_v39 }
 0x458   :  { %2450 = vmatprep.subr.bf16.mxu0 %v3083_v43  ;;  %2482 = vmatprep.subr.bf16.mxu1 %v3087_v46 }
 0x45b   :  { %2452 = vmatpush1.bf16.msra.mxu0 %v3094_v52  ;;  %2484 = vmatpush1.bf16.msra.mxu1 %v3098_v56 }
 0x45c   :  { %2454 = vmatprep.subr.bf16.mxu0 %v3102_v60  ;;  %2486 = vmatprep.subr.bf16.mxu1 %v3106_v1 }
 0x45f   :  { %2456 = vmatpush1.bf16.msra.mxu0 %v3113_v4  ;;  %2488 = vmatpush1.bf16.msra.mxu1 %v3117_v6 }
 0x460   :  { %2490 = vmatprep.subr.bf16.mxu0 %v2979_v17  ;;  %2522 = vmatprep.subr.bf16.mxu1 %v2981_v21 }
 0x515   :  { %v1142_v7 = vpop.f32.mrb[8].mxu0  ;;  %v1213_v9 = vpop.f32.mrb[8].mxu1 }
 0x516   :  { %v2673_v10 = vadd.f32 %v1142_v7, %v3169_v14  ;;  %v1144_v20 = vpop.f32.mrb[9].mxu0  ;;  %v1215_v23 = vpop.f32.mrb[9].mxu1  ;;  %v2689_v36 = vadd.f32 %v1213_v9, %v3178_v44 }
 0x517   :  { %v2674_v26 = vadd.f32 %v1144_v20, %v3171_v16  ;;  %v2690_v31 = vadd.f32 %v1215_v23, %v3175_v37 }
 0x518   :  { %v1979_v27 = vmul.f32 -1.442695, %v2673_v10 }
 0x519   :  { %v1980_v30 = vmul.f32 -1.442695, %v2674_v26  ;;  %v1981_v32 = vmul.f32 -1.442695, %v2690_v31 }
 0x51a   :  { %2799 = vpow2.f32 %v1979_v27 }
 0x51b   :  { %2801 = vpow2.f32 %v1980_v30 }
 0x51c   :  { %2803 = vpow2.f32 %v1981_v32 }
 0x51d   :  { %2805 = vtanh.f32 %v2689_v36 }
 0x524   :  { %v2800_v40 = vpop.eup %2799 }
 0x525   :  { %v2802_v41 = vpop.eup %2801  ;;  %v1225_v45 = vadd.f32 1.0, %v2800_v40 }
 0x526   :  { %v1231_v48 = vadd.f32 1.0, %v2802_v41  ;;  %v2804_v49 = vpop.eup %2803 }
 0x527   :  { %2807 = vrcp.f32 %v1225_v45  ;;  %v2806_v51 = vpop.eup %2805  ;;  %v1238_v59 = vadd.f32 1.0, %v2804_v49 }
 0x528   :  { %2809 = vrcp.f32 %v1231_v48 }
 0x529   :  { %2811 = vrcp.f32 %v1238_v59 }
 0x531   :  { %v2808_v53 = vpop.eup %2807 }
 0x532   :  { %v2810_v55 = vpop.eup %2809  ;;  %v1242_v57 = vmul.f32 %v2808_v53, %v2806_v51 }
 0x533   :  { %v1241_v62 = vmul.f32 %v2810_v55, %v3307_v3  ;;  %v2812_v12 = vpop.eup %2811 }
 0x535   :  { %v3349_v63 = vadd.f32 %v1242_v57, %v1241_v62 }
 0x537   :  { %2813 = vtanh.f32 %v3349_v63 }
 0x541   :  { %v2814_v13 = vpop.eup %2813 }
 0x542   :  { %v1245_v18 = vmul.f32 %v2814_v13, %v2812_v12  ;;  %v1760_v13 = vld [vmem:[%s3566_s4 + $0x18] sm:$0xff] }
 0x544   :  { %1311 = vmatmul.mubr.f32.vlgmr.msra.gmra.mrb[10].mxu0 %v1245_v18  ;;  %1382 = vmatmul.mubr.f32.vlgmr.msra.gmra.mrb[10].mxu1 %v1245_v18 }
 0x545   :  { %2492 = vmatpush1.bf16.msra.mxu0 %v2983_v22  ;;  %2524 = vmatpush1.bf16.msra.mxu1 %v2986_v25 }
 0x546   :  { %2494 = vmatprep.subr.bf16.mxu0 %v2990_v29  ;;  %2526 = vmatprep.subr.bf16.mxu1 %v2997_v34 }
 0x547   :  { %1480 = vmatprep.mubr.f32.mxu0 %v2890_v0  ;;  %1551 = vmatprep.mubr.f32.mxu1 %v2890_v0 }
 0x549   :  { %2496 = vmatpush1.bf16.msra.mxu0 %v2999_v35  ;;  %2528 = vmatpush1.bf16.msra.mxu1 %v3003_v38 }
 0x54a   :  { %2498 = vmatprep.subr.bf16.mxu0 %v3007_v42  ;;  %2530 = vmatprep.subr.bf16.mxu1 %v3014_v47 }
 0x54d   :  { %2500 = vmatpush1.bf16.msra.mxu0 %v3018_v50  ;;  %2532 = vmatpush1.bf16.msra.mxu1 %v3022_v54 }
 0x54e   :  { %2502 = vmatprep.subr.bf16.mxu0 %v3026_v58  ;;  %2534 = vmatprep.subr.bf16.mxu1 %v3030_v61 }
 0x551   :  { %2504 = vmatpush1.bf16.msra.mxu0 %v3037_v2  ;;  %2536 = vmatpush1.bf16.msra.mxu1 %v3041_v5 }
 0x552   :  { %2506 = vmatprep.subr.bf16.mxu0 %v3045_v8  ;;  %2538 = vmatprep.subr.bf16.mxu1 %v3049_v11 }
 0x555   :  { %2508 = vmatpush1.bf16.msra.mxu0 %v3056_v15  ;;  %2540 = vmatpush1.bf16.msra.mxu1 %v3060_v19 }
 0x556   :  { %2510 = vmatprep.subr.bf16.mxu0 %v3064_v24  ;;  %2542 = vmatprep.subr.bf16.mxu1 %v3068_v28 }
 0x559   :  { %2512 = vmatpush1.bf16.msra.mxu0 %v3075_v33  ;;  %2544 = vmatpush1.bf16.msra.mxu1 %v3079_v39 }
 0x55a   :  { %2514 = vmatprep.subr.bf16.mxu0 %v3083_v43  ;;  %2546 = vmatprep.subr.bf16.mxu1 %v3087_v46 }
 0x55d   :  { %2516 = vmatpush1.bf16.msra.mxu0 %v3094_v52  ;;  %2548 = vmatpush1.bf16.msra.mxu1 %v3098_v56 }
 0x55e   :  { %2518 = vmatprep.subr.bf16.mxu0 %v3102_v60  ;;  %2550 = vmatprep.subr.bf16.mxu1 %v3106_v1 }
 0x561   :  { %2520 = vmatpush1.bf16.msra.mxu0 %v3113_v4  ;;  %2552 = vmatpush1.bf16.msra.mxu1 %v3117_v6 }
 0x562   :  { %2554 = vmatprep.subr.bf16.mxu0 %v2979_v17  ;;  %2586 = vmatprep.subr.bf16.mxu1 %v2981_v21 }
 0x617   :  { %v1312_v3 = vpop.f32.mrb[10].mxu0  ;;  %v1383_v7 = vpop.f32.mrb[10].mxu1 }
 0x618   :  { %v2675_v9 = vadd.f32 %v1312_v3, %v3169_v14  ;;  %v1314_v10 = vpop.f32.mrb[11].mxu0  ;;  %v1385_v20 = vpop.f32.mrb[11].mxu1  ;;  %v2691_v32 = vadd.f32 %v1383_v7, %v3178_v44  ;;  %v1761_v3 = vld [vmem:[%s3566_s4 + $0x20] sm:$0xff]  ;;  %v1762_v7 = vld [vmem:[%s3566_s4 + $0x28] sm:$0xff] }
 0x619   :  { %v2676_v23 = vadd.f32 %v1314_v10, %v3171_v16  ;;  %v2692_v30 = vadd.f32 %v1385_v20, %v3175_v37  ;;  %v1763_v10 = vld [vmem:[%s3566_s4 + $0x30] sm:$0xff]  ;;  %v1764_v20 = vld [vmem:[%s3566_s4 + $0x38] sm:$0xff] }
 0x61a   :  { %v1982_v26 = vmul.f32 -1.442695, %v2675_v9  ;;  %v2624_v9 = vpack.c.bf16 %v1762_v7, %v1761_v3 }
 0x61b   :  { %v1983_v27 = vmul.f32 -1.442695, %v2676_v23  ;;  %v1984_v31 = vmul.f32 -1.442695, %v2692_v30  ;;  %v2627_v23 = vpack.c.bf16 %v1764_v20, %v1763_v10  ;;  %v1865_v10 = vld [vmem:[%s3568_s6 + $0x70] sm:$0xff]  ;;  %v1866_v20 = vld [vmem:[%s3568_s6 + $0x78] sm:$0xff] }
 0x61c   :  { %2815 = vpow2.f32 %v1982_v26  ;;  %v1765_v26 = vld [vmem:[%s3566_s4 + $0x40] sm:$0xff] }
 0x61d   :  { %2817 = vpow2.f32 %v1983_v27  ;;  %v1766_v27 = vld [vmem:[%s3566_s4 + $0x48] sm:$0xff] }
 0x61e   :  { %2819 = vpow2.f32 %v1984_v31  ;;  %v2630_v30 = vpack.c.bf16 %v1766_v27, %v1765_v26  ;;  %v1767_v31 = vld [vmem:[%s3566_s4 + $0x50] sm:$0xff] }
 0x61f   :  { %2821 = vtanh.f32 %v2691_v32  ;;  %v1768_v32 = vld [vmem:[%s3566_s4 + $0x58] sm:$0xff] }
 0x626   :  { %v2816_v17 = vpop.eup %2815 }
 0x627   :  { %v2818_v36 = vpop.eup %2817  ;;  %v1395_v21 = vadd.f32 1.0, %v2816_v17  ;;  %v2633_v17 = vpack.c.bf16 %v1768_v32, %v1767_v31  ;;  %v1992_v32 = vld [vmem:[%s3569_s7] ss:$0 sm:$0xff] }
 0x628   :  { %v1401_v40 = vadd.f32 1.0, %v2818_v36  ;;  %v2820_v41 = vpop.eup %2819  ;;  %v1769_v36 = vld [vmem:[%s3566_s4 + $0x60] sm:$0xff] }
 0x629   :  { %2823 = vrcp.f32 %v1395_v21  ;;  %v2822_v45 = vpop.eup %2821  ;;  %v1408_v53 = vadd.f32 1.0, %v2820_v41  ;;  %v1770_v21 = vld [vmem:[%s3566_s4 + $0x68] sm:$0xff]  ;;  %v1771_v41 = vld [vmem:[%s3566_s4 + $0x70] sm:$0xff] }
 0x62a   :  { %2825 = vrcp.f32 %v1401_v40  ;;  %v2636_v40 = vpack.c.bf16 %v1770_v21, %v1769_v36 }
 0x62b   :  { %2827 = vrcp.f32 %v1408_v53 }
 0x633   :  { %v2824_v48 = vpop.eup %2823 }
 0x634   :  { %v2826_v49 = vpop.eup %2825  ;;  %v1412_v51 = vmul.f32 %v2824_v48, %v2822_v45  ;;  %v1772_v45 = vld [vmem:[%s3566_s4 + $0x78] sm:$0xff] }
 0x635   :  { %v1411_v55 = vmul.f32 %v2826_v49, %v3349_v63  ;;  %v2828_v59 = vpop.eup %2827  ;;  %v1759_v63 = vld [vmem:[%s3566_s4 + $0x10] sm:$0xff]  ;;  %v2639_v48 = vpack.c.bf16 %v1772_v45, %v1771_v41  ;;  %v1852_v49 = vld [vmem:[%s3568_s6 + $0x8] sm:$0xff] }
 0x636   :  { %v2621_v18 = vpack.c.bf16 %v1760_v13, %v1759_v63 }
 0x637   :  { %v3391_v57 = vadd.f32 %v1412_v51, %v1411_v55  ;;  %v1853_v51 = vld [vmem:[%s3568_s6 + $0x10] sm:$0xff]  ;;  %v1854_v55 = vld [vmem:[%s3568_s6 + $0x18] sm:$0xff] }
 0x639   :  { %2829 = vtanh.f32 %v3391_v57 }
 0x643   :  { %v2830_v62 = vpop.eup %2829 }
 0x644   :  { %v1415_v12 = vmul.f32 %v2830_v62, %v2828_v59  ;;  %v1855_v59 = vld [vmem:[%s3568_s6 + $0x20] sm:$0xff]  ;;  %v1856_v62 = vld [vmem:[%s3568_s6 + $0x28] sm:$0xff] }
 0x646   :  { %1481 = vmatmul.mubr.f32.vlgmr.msra.gmra.mrb[12].mxu0 %v1415_v12  ;;  %1552 = vmatmul.mubr.f32.vlgmr.msra.gmra.mrb[12].mxu1 %v1415_v12  ;;  %v2648_v12 = vpack.c.bf16 %v1856_v62, %v1855_v59 }
 0x647   :  { %2556 = vmatpush1.bf16.msra.mxu0 %v2983_v22  ;;  %2588 = vmatpush1.bf16.msra.mxu1 %v2986_v25 }
 0x648   :  { %2558 = vmatprep.subr.bf16.mxu0 %v2990_v29  ;;  %2590 = vmatprep.subr.bf16.mxu1 %v2997_v34 }
 0x649   :  { %1650 = vmatprep.mubr.f32.mxu0 %v2890_v0  ;;  %1721 = vmatprep.mubr.f32.mxu1 %v2890_v0 }
 0x64b   :  { %2560 = vmatpush1.bf16.msra.mxu0 %v2999_v35  ;;  %2592 = vmatpush1.bf16.msra.mxu1 %v3003_v38 }
 0x64c   :  { %2562 = vmatprep.subr.bf16.mxu0 %v3007_v42  ;;  %2594 = vmatprep.subr.bf16.mxu1 %v3014_v47 }
 0x64f   :  { %2564 = vmatpush1.bf16.msra.mxu0 %v3018_v50  ;;  %2596 = vmatpush1.bf16.msra.mxu1 %v3022_v54 }
 0x650   :  { %2566 = vmatprep.subr.bf16.mxu0 %v3026_v58  ;;  %2598 = vmatprep.subr.bf16.mxu1 %v3030_v61 }
 0x653   :  { %2568 = vmatpush1.bf16.msra.mxu0 %v3037_v2  ;;  %2600 = vmatpush1.bf16.msra.mxu1 %v3041_v5 }
 0x654   :  { %2570 = vmatprep.subr.bf16.mxu0 %v3045_v8  ;;  %2602 = vmatprep.subr.bf16.mxu1 %v3049_v11 }
 0x657   :  { %2572 = vmatpush1.bf16.msra.mxu0 %v3056_v15  ;;  %2604 = vmatpush1.bf16.msra.mxu1 %v3060_v19 }
 0x658   :  { %2574 = vmatprep.subr.bf16.mxu0 %v3064_v24  ;;  %2606 = vmatprep.subr.bf16.mxu1 %v3068_v28 }
 0x65b   :  { %2576 = vmatpush1.bf16.msra.mxu0 %v3075_v33  ;;  %2608 = vmatpush1.bf16.msra.mxu1 %v3079_v39 }
 0x65c   :  { %2578 = vmatprep.subr.bf16.mxu0 %v3083_v43  ;;  %2610 = vmatprep.subr.bf16.mxu1 %v3087_v46 }
 0x65f   :  { %2580 = vmatpush1.bf16.msra.mxu0 %v3094_v52  ;;  %2612 = vmatpush1.bf16.msra.mxu1 %v3098_v56 }
 0x660   :  { %2582 = vmatprep.subr.bf16.mxu0 %v3102_v60  ;;  %2614 = vmatprep.subr.bf16.mxu1 %v3106_v1  ;;  %v1757_v60 = vld [vmem:[%s3566_s4] sm:$0xff]  ;;  %v1758_v1 = vld [vmem:[%s3566_s4 + $0x8] sm:$0xff] }
 0x663   :  { %2584 = vmatpush1.bf16.msra.mxu0 %v3113_v4  ;;  %2616 = vmatpush1.bf16.msra.mxu1 %v3117_v6  ;;  %v2618_v4 = vpack.c.bf16 %v1758_v1, %v1757_v60  ;;  %v2891_v6 = vmov 0.0|0.0  }
 0x664   :  { %2617 = vmatprep.subr.bf16.mxu0 %v2891_v6  ;;  %2641 = vmatprep.subr.bf16.mxu1 %v2891_v6 }
 0x719   :  { %v1482_v22 = vpop.f32.mrb[12].mxu0  ;;  %v1553_v25 = vpop.f32.mrb[12].mxu1 }
 0x71a   :  { %v2677_v29 = vadd.f32 %v1482_v22, %v3169_v14  ;;  %v1484_v34 = vpop.f32.mrb[13].mxu0  ;;  %v1555_v35 = vpop.f32.mrb[13].mxu1  ;;  %v2693_v58 = vadd.f32 %v1553_v25, %v3178_v44  ;;  %v1857_v22 = vld [vmem:[%s3568_s6 + $0x30] sm:$0xff]  ;;  %v1858_v25 = vld [vmem:[%s3568_s6 + $0x38] sm:$0xff] }
 0x71b   :  { %v2678_v38 = vadd.f32 %v1484_v34, %v3171_v16  ;;  %v2694_v50 = vadd.f32 %v1555_v35, %v3175_v37  ;;  %v1859_v34 = vld [vmem:[%s3568_s6 + $0x40] sm:$0xff]  ;;  %v1860_v35 = vld [vmem:[%s3568_s6 + $0x48] sm:$0xff] }
 0x71c   :  { %v1985_v42 = vmul.f32 -1.442695, %v2677_v29  ;;  %v2651_v29 = vpack.c.bf16 %v1858_v25, %v1857_v22 }
 0x71d   :  { %v1986_v47 = vmul.f32 -1.442695, %v2678_v38  ;;  %v1987_v54 = vmul.f32 -1.442695, %v2694_v50  ;;  %v2654_v38 = vpack.c.bf16 %v1860_v35, %v1859_v34 }
 0x71e   :  { %2831 = vpow2.f32 %v1985_v42  ;;  %v1861_v42 = vld [vmem:[%s3568_s6 + $0x50] sm:$0xff] }
 0x71f   :  { %2833 = vpow2.f32 %v1986_v47  ;;  %v1862_v47 = vld [vmem:[%s3568_s6 + $0x58] sm:$0xff] }
 0x720   :  { %2835 = vpow2.f32 %v1987_v54  ;;  %v2657_v50 = vpack.c.bf16 %v1862_v47, %v1861_v42  ;;  %v1863_v54 = vld [vmem:[%s3568_s6 + $0x60] sm:$0xff] }
 0x721   :  { %2837 = vtanh.f32 %v2693_v58  ;;  %v1864_v58 = vld [vmem:[%s3568_s6 + $0x68] sm:$0xff] }
 0x728   :  { %v2832_v61 = vpop.eup %2831 }
 0x729   :  { %v2834_v2 = vpop.eup %2833  ;;  %v1565_v5 = vadd.f32 1.0, %v2832_v61  ;;  %v2660_v61 = vpack.c.bf16 %v1864_v58, %v1863_v54 }
 0x72a   :  { %v1571_v8 = vadd.f32 1.0, %v2834_v2  ;;  %v2836_v11 = vpop.eup %2835 }
 0x72b   :  { %2839 = vrcp.f32 %v1565_v5  ;;  %v2838_v15 = vpop.eup %2837  ;;  %v1578_v33 = vadd.f32 1.0, %v2836_v11 }
 0x72c   :  { %2841 = vrcp.f32 %v1571_v8 }
 0x72d   :  { %2843 = vrcp.f32 %v1578_v33 }
 0x735   :  { %v2840_v19 = vpop.eup %2839 }
 0x736   :  { %v2842_v24 = vpop.eup %2841  ;;  %v1582_v28 = vmul.f32 %v2840_v19, %v2838_v15 }
 0x737   :  { %v1581_v39 = vmul.f32 %v2842_v24, %v3391_v57  ;;  %v2844_v46 = vpop.eup %2843  ;;  %v2645_v57 = vpack.c.bf16 %v1854_v55, %v1853_v51 }
 0x739   :  { %v3431_v43 = vadd.f32 %v1582_v28, %v1581_v39 }
 0x73b   :  { %2845 = vtanh.f32 %v3431_v43 }
 0x745   :  { %v2846_v52 = vpop.eup %2845 }
 0x746   :  { %v1585_v56 = vmul.f32 %v2846_v52, %v2844_v46 }
 0x748   :  { %1651 = vmatmul.mubr.f32.vlgmr.msra.gmra.mrb[14].mxu0 %v1585_v56  ;;  %1722 = vmatmul.mubr.f32.vlgmr.msra.gmra.mrb[14].mxu1 %v1585_v56 }
 0x749   :  { %2619 = vmatpush3.bf16.msra.mxu0 %v2618_v4  ;;  %2059 = vmatprep.mubr.msk.f32.mxu0 %vm2892_vm1, %v2890_v0 }
 0x74a   :  { %2620 = vmatprep.subr.bf16.mxu0 %v2891_v6  ;;  %2094 = vmatprep.mubr.msk.f32.mxu1 %vm2892_vm1, %v2890_v0  ;;  %v1851_v0 = vld [vmem:[%s3568_s6] sm:$0xff] }
 0x74b   :  { %v2642_v53 = vpack.c.bf16 %v1852_v49, %v1851_v0 }
 0x74d   :  { %2622 = vmatpush3.bf16.msra.mxu0 %v2621_v18  ;;  %2643 = vmatpush3.bf16.msra.mxu1 %v2642_v53 }
 0x74e   :  { %2623 = vmatprep.subr.bf16.mxu0 %v2891_v6  ;;  %2644 = vmatprep.subr.bf16.mxu1 %v2891_v6 }
 0x751   :  { %2625 = vmatpush3.bf16.msra.mxu0 %v2624_v9  ;;  %2646 = vmatpush3.bf16.msra.mxu1 %v2645_v57 }
 0x752   :  { %2626 = vmatprep.subr.bf16.mxu0 %v2891_v6  ;;  %2647 = vmatprep.subr.bf16.mxu1 %v2891_v6 }
 0x755   :  { %2628 = vmatpush3.bf16.msra.mxu0 %v2627_v23  ;;  %2649 = vmatpush3.bf16.msra.mxu1 %v2648_v12  ;;  %v2663_v23 = vpack.c.bf16 %v1866_v20, %v1865_v10 }
 0x756   :  { %2629 = vmatprep.subr.bf16.mxu0 %v2891_v6  ;;  %2650 = vmatprep.subr.bf16.mxu1 %v2891_v6 }
 0x759   :  { %2631 = vmatpush3.bf16.msra.mxu0 %v2630_v30  ;;  %2652 = vmatpush3.bf16.msra.mxu1 %v2651_v29 }
 0x75a   :  { %2632 = vmatprep.subr.bf16.mxu0 %v2891_v6  ;;  %2653 = vmatprep.subr.bf16.mxu1 %v2891_v6 }
 0x75d   :  { %2634 = vmatpush3.bf16.msra.mxu0 %v2633_v17  ;;  %2655 = vmatpush3.bf16.msra.mxu1 %v2654_v38 }
 0x75e   :  { %2635 = vmatprep.subr.bf16.mxu0 %v2891_v6  ;;  %2656 = vmatprep.subr.bf16.mxu1 %v2891_v6 }
 0x761   :  { %2637 = vmatpush3.bf16.msra.mxu0 %v2636_v40  ;;  %2658 = vmatpush3.bf16.msra.mxu1 %v2657_v50 }
 0x762   :  { %2638 = vmatprep.subr.bf16.mxu0 %v2891_v6  ;;  %2659 = vmatprep.subr.bf16.mxu1 %v2891_v6 }
 0x765   :  { %2640 = vmatpush3.bf16.msra.mxu0 %v2639_v48  ;;  %2661 = vmatpush3.bf16.msra.mxu1 %v2660_v61 }
 0x766   :  { %2662 = vmatprep.subr.bf16.mxu1 %v2891_v6 }
 0x769   :  { %2664 = vmatpush3.bf16.msra.mxu1 %v2663_v23 }
 0x81b   :  { %v1652_v2 = vpop.f32.mrb[14].mxu0  ;;  %v1723_v5 = vpop.f32.mrb[14].mxu1 }
 0x81c   :  { %v2679_v8 = vadd.f32 %v1652_v2, %v3169_v14  ;;  %v1654_v11 = vpop.f32.mrb[15].mxu0  ;;  %v1725_v15 = vpop.f32.mrb[15].mxu1  ;;  %v2695_v46 = vadd.f32 %v1723_v5, %v3178_v44 }
 0x81d   :  { %v2680_v19 = vadd.f32 %v1654_v11, %v3171_v16  ;;  %v2696_v33 = vadd.f32 %v1725_v15, %v3175_v37 }
 0x81e   :  { %v1988_v24 = vmul.f32 -1.442695, %v2679_v8 }
 0x81f   :  { %v1989_v28 = vmul.f32 -1.442695, %v2680_v19  ;;  %v1990_v39 = vmul.f32 -1.442695, %v2696_v33 }
 0x820   :  { %2847 = vpow2.f32 %v1988_v24 }
 0x821   :  { %2849 = vpow2.f32 %v1989_v28 }
 0x822   :  { %2851 = vpow2.f32 %v1990_v39 }
 0x823   :  { %2853 = vtanh.f32 %v2695_v46 }
 0x82a   :  { %v2848_v52 = vpop.eup %2847 }
 0x82b   :  { %v2850_v56 = vpop.eup %2849  ;;  %v1735_v60 = vadd.f32 1.0, %v2848_v52 }
 0x82c   :  { %v1741_v1 = vadd.f32 1.0, %v2850_v56  ;;  %v2852_v14 = vpop.eup %2851 }
 0x82d   :  { %2855 = vrcp.f32 %v1735_v60  ;;  %v2854_v4 = vpop.eup %2853  ;;  %v1748_v13 = vadd.f32 1.0, %v2852_v14 }
 0x82e   :  { %2857 = vrcp.f32 %v1741_v1 }
 0x82f   :  { %2859 = vrcp.f32 %v1748_v13 }
 0x837   :  { %v2856_v16 = vpop.eup %2855 }
 0x838   :  { %v2858_v6 = vpop.eup %2857  ;;  %v1752_v63 = vmul.f32 %v2856_v16, %v2854_v4 }
 0x839   :  { %v1751_v18 = vmul.f32 %v2858_v6, %v3431_v43  ;;  %v2860_v44 = vpop.eup %2859  ;;  %v1991_v43 = vld [vmem:[%s3567_s5] ss:$0 sm:$0xff] }
 0x83b   :  { %v1753_v37 = vadd.f32 %v1752_v63, %v1751_v18 }
 0x83d   :  { %2861 = vtanh.f32 %v1753_v37 }
 0x847   :  { %v2862_v3 = vpop.eup %2861 }
 0x848   :  { %v1755_v7 = vmul.f32 %v2862_v3, %v2860_v44 }
 0x84a   :  { %v1756_v9 = vmax.f32 %v1755_v7, 0.0 }
 0x84c   :  { %2060 = vmatmul.mubr.f32.vlgmr.msra.gmra.mrb[16].mxu0 %v1756_v9 }
 0x91f   :  { %v1846_v26 = vpop.f32.mrb[16].mxu0 }
 0x920   :  { %v1847_v27 = vadd.f32 %v1991_v43, %v1846_v26  ;;  %v2061_v30 = vpop.f32.mrb[17].mxu0 }
 0x922   :  { %v1850_v31 = vmax.f32 %v1847_v27, 0.0 }
 0x924   :  { %2095 = vmatmul.mubr.f32.vlgmr.msra.gmra.mrb[16].mxu1 %v1850_v31 }
 0x9f7   :  { %v1940_v17 = vpop.f32.mrb[16].mxu1 }
 0x9f8   :  { %v1941_v36 = vadd.f32 %v1992_v32, %v1940_v17  ;;  %v2096_v21 = vpop.f32.mrb[17].mxu1 }
 0x9fa   :  { %1945 = vst.msk [vmem:[%s3570_s8] sm:$0xff] %vm1944_vm2, %v1941_v36 }
 0x9fb   :  { %1950 = vsyncpa [#allocation3], 1 }

</bundles_post_ra>
